<compile_context>
chip_gen: v5e
topology: v5e:2x2
jax: 0.10.0
libtpu: 0.0.40
codegen_flags: <defaults>
</compile_context>

<pallas_src>
import math

import numpy as np
import jax
import jax.numpy as jnp
from jax.experimental import pallas as pl
from jax.experimental.pallas import tpu as pltpu  # noqa: F401  (TPU backend)

LANES = 128       # lane width of the padded, lane-dense output slab
ROWS_PAD = 8      # sublane padding of the output slab
BN_EPS = 1e-5     # PyTorch BatchNorm2d default eps


def _full_spec(shape):
    nd = len(shape)
    return pl.BlockSpec(shape, lambda i, _nd=nd: (0,) * _nd)


# ---------------- fused kernel ----------------

def fused_cnn_kernel(*refs):
    # refs = (x, [rhn, mright, fold, unfold, gb] * n_layers,
    #         selh, wlin, blin, out)
    x_ref = refs[0]
    selh_ref, wlin_ref, blin_ref = refs[-4], refs[-3], refs[-2]
    o_ref = refs[-1]
    layer_refs = refs[1:-4]
    n_layers = len(layer_refs) // 5

    # Activations stay as a (N*H, W*C) matrix end-to-end: each layer's output
    # (N*Ho, Wo*Cout) is already the next layer's input layout.
    h = x_ref[...]                                    # (N*H, W*Cin) bf16

    for l in range(n_layers):
        rhn_ref, mr_ref, fold_ref, unfold_ref, gb_ref = layer_refs[5 * l: 5 * l + 5]
        rows_out = rhn_ref.shape[1]                   # N*Ho
        cols_out = mr_ref.shape[2]                    # Wo*Cout
        cout = fold_ref.shape[1]
        m = rows_out * (cols_out // cout)             # N*Ho*Wo elems / channel

        hb = h.astype(jnp.bfloat16)                   # one cast per layer

        # Conv(k=3, s=2, p=1): 3 row-select matmuls (one per kh, reused for all
        # kw) + 9 accumulating tap-weight matmuls, all native bf16 on the MXU
        # with f32 accumulation.
        acc = jnp.zeros((rows_out, cols_out), jnp.float32)
        for kh in range(3):
            g = jnp.dot(rhn_ref[kh], hb,
                        preferred_element_type=jnp.float32).astype(jnp.bfloat16)
            for kw in range(3):
                acc = acc + jnp.dot(g, mr_ref[3 * kh + kw],
                                    preferred_element_type=jnp.float32)

        # Training-mode BatchNorm2d (f32 epilogue, two-pass centered variance)
        # + ReLU.  Per-channel stats pool the N*Ho rows and the Wo column
        # groups; group fold/unfold are tiny one-hot matmuls.
        inv_m = 1.0 / m
        mean_c = jnp.sum(jnp.dot(acc, fold_ref[...],
                                 preferred_element_type=jnp.float32),
                         axis=0, keepdims=True) * inv_m           # (1, Cout)
        mean_cols = jnp.dot(mean_c, unfold_ref[...],
                            preferred_element_type=jnp.float32)   # (1, Wo*Cout)
        cen = acc - mean_cols
        var_c = jnp.sum(jnp.dot(cen * cen, fold_ref[...],
                                preferred_element_type=jnp.float32),
                        axis=0, keepdims=True) * inv_m            # (1, Cout)
        gamma = gb_ref[0:1, :]
        beta = gb_ref[1:2, :]
        scale_c = gamma * jax.lax.rsqrt(var_c + BN_EPS)
        scale_cols = jnp.dot(scale_c, unfold_ref[...],
                             preferred_element_type=jnp.float32)
        shift_cols = jnp.dot(beta, unfold_ref[...],
                             preferred_element_type=jnp.float32)
        h = jnp.maximum(cen * scale_cols + shift_cols, 0.0)       # (N*Ho, Wo*Cout)

    # Flatten(NCHW) + Linear, emitted as one lane-dense (8, 128) f32 slab.
    hb = h.astype(jnp.bfloat16)
    z = jnp.zeros(o_ref.shape, jnp.float32)
    for j in range(selh_ref.shape[0]):                # H3 (= 2) taps
        rows = jnp.dot(selh_ref[j], hb,
                       preferred_element_type=jnp.float32).astype(jnp.bfloat16)
        z = z + jnp.dot(rows, wlin_ref[j], preferred_element_type=jnp.float32)
    o_ref[...] = z + blin_ref[...]


# ---------------- wrapper ----------------

def fused_forward(x, layers, selh, wlin, blin, out_dim):
    n, c, hh, ww = x.shape
    # One fused 8 KiB NCHW -> (N*H, W*C) transpose + bf16 cast feeding layer 0;
    # everything downstream stays in this layout inside the single kernel.
    x2d = jnp.transpose(x, (0, 2, 3, 1)).reshape(n * hh, ww * c).astype(jnp.bfloat16)

    operands = [x2d]
    in_specs = [_full_spec(x2d.shape)]
    for layer in layers:
        for a in layer:
            operands.append(a)
            in_specs.append(_full_spec(a.shape))
    for a in (selh, wlin, blin):
        operands.append(a)
        in_specs.append(_full_spec(a.shape))

    rows_pad = selh.shape[1]
    out_full = pl.pallas_call(
        fused_cnn_kernel,
        grid=(1,),
        in_specs=in_specs,
        out_specs=_full_spec((rows_pad, LANES)),
        out_shape=jax.ShapeDtypeStruct((rows_pad, LANES), jnp.float32),
    )(*operands)
    return out_full[:n, :out_dim]


# ---------------- parameter init (matches previous, accepted version) ----------------

def init_params(key, in_shape, out_dim, hid_dim):
    C, H, W = in_shape
    n_layers = int(math.log2(min(H, W)) - 1)
    channels = [C] + [hid_dim * (2 ** i) for i in range(n_layers)]
    convs = []
    for i in range(n_layers):
        cin, cout = channels[i], channels[i + 1]
        key, sub = jax.random.split(key)
        # kaiming_normal_(mode='fan_out', nonlinearity='relu'), conv bias=False
        fan_out = cout * 3 * 3
        std = math.sqrt(2.0 / fan_out)
        w = jax.random.normal(sub, (cout, cin, 3, 3), jnp.float32) * std
        gamma = jnp.ones((cout,), jnp.float32)   # BN weight = 1
        beta = jnp.zeros((cout,), jnp.float32)   # BN bias = 0
        convs.append((w, gamma, beta))
    end_h = H // (2 ** n_layers)
    end_w = W // (2 ** n_layers)
    fan_in = channels[-1] * end_h * end_w
    key, sub = jax.random.split(key)
    bound = math.sqrt(2.0) * math.sqrt(3.0 / fan_in)
    wl = jax.random.uniform(sub, (out_dim, fan_in), jnp.float32, -bound, bound)
    bl = jnp.zeros((out_dim,), jnp.float32)
    return {"convs": convs, "linear": (wl, bl)}


# ---------------- packing: small per-axis selectors + folded tap weights ----------------

def _row_selectors(n, h):
    """kron(I_N, RH[kh]) for kh=0..2: (3, N*Ho, N*H) one-hot row selectors."""
    ho = h // 2
    out = np.zeros((3, n * ho, n * h), np.float32)
    for kh in range(3):
        for b in range(n):
            for oh in range(ho):
                ih = 2 * oh + kh - 1
                if 0 <= ih < h:
                    out[kh, b * ho + oh, b * h + ih] = 1.0
    return out


def _right_mats(w, cin, cout, wconv):
    """MR[t]: (9, W*Cin, Wo*Cout) = kw column selection folded with the tap weight."""
    wo = w // 2
    out = np.zeros((9, w * cin, wo * cout), np.float32)
    wn = np.asarray(wconv, np.float32)            # (cout, cin, 3, 3)
    for kh in range(3):
        for kw in range(3):
            t = 3 * kh + kw
            for ow in range(wo):
                iw = 2 * ow + kw - 1
                if not (0 <= iw < w):
                    continue
                out[t, iw * cin:(iw + 1) * cin, ow * cout:(ow + 1) * cout] = \
                    wn[:, :, kh, kw].T            # (cin, cout)
    return out


def pack_for_kernel(params, batch, in_shape):
    c, h, w = in_shape
    layers = []
    hh, ww, cin = h, w, c
    for (wconv, gamma, beta) in params["convs"]:
        cout = wconv.shape[0]
        wo = ww // 2
        rhn = jnp.asarray(_row_selectors(batch, hh), jnp.bfloat16)
        mr = jnp.asarray(_right_mats(ww, cin, cout, wconv), jnp.bfloat16)
        fold = np.zeros((wo * cout, cout), np.float32)
        for ow in range(wo):
            fold[ow * cout:(ow + 1) * cout, :] = np.eye(cout, dtype=np.float32)
        unfold = np.ascontiguousarray(fold.T)
        gb = jnp.stack([gamma, beta], axis=0).astype(jnp.float32)   # (2, cout)
        layers.append((rhn, mr, jnp.asarray(fold), jnp.asarray(unfold), gb))
        hh, ww, cin = hh // 2, ww // 2, cout

    # Final Flatten(NCHW) + Linear: H3 row-selector taps + repacked weights.
    wl, bl = params["linear"]
    out_dim = wl.shape[0]
    h3, w3, c3 = hh, ww, cin
    assert wl.shape[1] == c3 * h3 * w3
    rows_pad = max(ROWS_PAD, -(-batch // 8) * 8)

    selh = np.zeros((h3, rows_pad, batch * h3), np.float32)
    for j in range(h3):
        for b in range(batch):
            selh[j, b, b * h3 + j] = 1.0

    wl4 = np.asarray(wl, np.float32).reshape(out_dim, c3, h3, w3)   # NCHW flatten order
    wlin = np.zeros((h3, w3 * c3, LANES), np.float32)
    for j in range(h3):
        for w_ in range(w3):
            for cc in range(c3):
                wlin[j, w_ * c3 + cc, :out_dim] = wl4[:, cc, j, w_]
    blin = np.zeros((1, LANES), np.float32)
    blin[0, :out_dim] = np.asarray(bl, np.float32)

    return (layers,
            jnp.asarray(selh, jnp.bfloat16),
            jnp.asarray(wlin, jnp.bfloat16),
            jnp.asarray(blin),
            out_dim)


# ---------------- pure-JAX reference (independent path, for correctness) ----------------

def reference_forward(x, params):
    h = x  # NCHW
    for (w, gamma, beta) in params["convs"]:
        y = jax.lax.conv_general_dilated(
            h, w, window_strides=(2, 2), padding=((1, 1), (1, 1)),
            dimension_numbers=("NCHW", "OIHW", "NCHW"))
        mean = jnp.mean(y, axis=(0, 2, 3), keepdims=True)
        var = jnp.mean(jnp.square(y - mean), axis=(0, 2, 3), keepdims=True)
        y = (y - mean) * jax.lax.rsqrt(var + BN_EPS)
        y = y * gamma.reshape(1, -1, 1, 1) + beta.reshape(1, -1, 1, 1)
        h = jnp.maximum(y, 0.0)
    wl, bl = params["linear"]
    return h.reshape(h.shape[0], -1) @ wl.T + bl


if __name__ == "__main__":
    key = jax.random.PRNGKey(0)
    in_shape = (4, 16, 16)
    out_dim = 10
    hid_dim = 8
    batch = 2

    kx, kparam = jax.random.split(key)
    x = jax.random.normal(kx, (batch,) + in_shape, jnp.float32)
    params = init_params(kparam, in_shape, out_dim, hid_dim)
    layers, selh, wlin, blin, od = pack_for_kernel(params, batch, in_shape)

    fwd = jax.jit(fused_forward, static_argnums=(5,))
    out = jax.block_until_ready(fwd(x, layers, selh, wlin, blin, od))

    assert out.shape == (batch, out_dim), out.shape
    assert bool(jnp.all(jnp.isfinite(out)))

    ref = reference_forward(x, params)
    max_abs_diff = float(jnp.max(jnp.abs(out - ref)))
    assert bool(jnp.allclose(out, ref, rtol=5e-2, atol=5e-2)), max_abs_diff

    print("KERNEL_OK")
</pallas_src>

<mosaic_0001>
module attributes {stable_mosaic.version = 11 : i64} {
  func.func @fused_cnn_kernel(%arg0: i32, %arg1: memref<32x64xbf16, #tpu.memory_space<vmem>>, %arg2: memref<3x16x32xbf16, #tpu.memory_space<vmem>>, %arg3: memref<9x64x64xbf16, #tpu.memory_space<vmem>>, %arg4: memref<64x8xf32, #tpu.memory_space<vmem>>, %arg5: memref<8x64xf32, #tpu.memory_space<vmem>>, %arg6: memref<2x8xf32, #tpu.memory_space<vmem>>, %arg7: memref<3x8x16xbf16, #tpu.memory_space<vmem>>, %arg8: memref<9x64x64xbf16, #tpu.memory_space<vmem>>, %arg9: memref<64x16xf32, #tpu.memory_space<vmem>>, %arg10: memref<16x64xf32, #tpu.memory_space<vmem>>, %arg11: memref<2x16xf32, #tpu.memory_space<vmem>>, %arg12: memref<3x4x8xbf16, #tpu.memory_space<vmem>>, %arg13: memref<9x64x64xbf16, #tpu.memory_space<vmem>>, %arg14: memref<64x32xf32, #tpu.memory_space<vmem>>, %arg15: memref<32x64xf32, #tpu.memory_space<vmem>>, %arg16: memref<2x32xf32, #tpu.memory_space<vmem>>, %arg17: memref<2x8x4xbf16, #tpu.memory_space<vmem>>, %arg18: memref<2x64x128xbf16, #tpu.memory_space<vmem>>, %arg19: memref<1x128xf32, #tpu.memory_space<vmem>>, %arg20: memref<8x128xf32, #tpu.memory_space<vmem>>) attributes {dimension_semantics = [#tpu.dimension_semantics<arbitrary>], iteration_bounds = array<i64: 1>, scalar_prefetch = 0 : i64, scratch_operands = 0 : i64, tpu.core_type = #tpu.core_type<tc>, window_params = [{pipeline_mode = #tpu.pipeline_mode<synchronous>, transform_indices = @transform_0, window_bounds = array<i64: 32, 64>}, {pipeline_mode = #tpu.pipeline_mode<synchronous>, transform_indices = @transform_1, window_bounds = array<i64: 3, 16, 32>}, {pipeline_mode = #tpu.pipeline_mode<synchronous>, transform_indices = @transform_2, window_bounds = array<i64: 9, 64, 64>}, {pipeline_mode = #tpu.pipeline_mode<synchronous>, transform_indices = @transform_3, window_bounds = array<i64: 64, 8>}, {pipeline_mode = #tpu.pipeline_mode<synchronous>, transform_indices = @transform_4, window_bounds = array<i64: 8, 64>}, {pipeline_mode = #tpu.pipeline_mode<synchronous>, transform_indices = @transform_5, window_bounds = array<i64: 2, 8>}, {pipeline_mode = #tpu.pipeline_mode<synchronous>, transform_indices = @transform_6, window_bounds = array<i64: 3, 8, 16>}, {pipeline_mode = #tpu.pipeline_mode<synchronous>, transform_indices = @transform_7, window_bounds = array<i64: 9, 64, 64>}, {pipeline_mode = #tpu.pipeline_mode<synchronous>, transform_indices = @transform_8, window_bounds = array<i64: 64, 16>}, {pipeline_mode = #tpu.pipeline_mode<synchronous>, transform_indices = @transform_9, window_bounds = array<i64: 16, 64>}, {pipeline_mode = #tpu.pipeline_mode<synchronous>, transform_indices = @transform_10, window_bounds = array<i64: 2, 16>}, {pipeline_mode = #tpu.pipeline_mode<synchronous>, transform_indices = @transform_11, window_bounds = array<i64: 3, 4, 8>}, {pipeline_mode = #tpu.pipeline_mode<synchronous>, transform_indices = @transform_12, window_bounds = array<i64: 9, 64, 64>}, {pipeline_mode = #tpu.pipeline_mode<synchronous>, transform_indices = @transform_13, window_bounds = array<i64: 64, 32>}, {pipeline_mode = #tpu.pipeline_mode<synchronous>, transform_indices = @transform_14, window_bounds = array<i64: 32, 64>}, {pipeline_mode = #tpu.pipeline_mode<synchronous>, transform_indices = @transform_15, window_bounds = array<i64: 2, 32>}, {pipeline_mode = #tpu.pipeline_mode<synchronous>, transform_indices = @transform_16, window_bounds = array<i64: 2, 8, 4>}, {pipeline_mode = #tpu.pipeline_mode<synchronous>, transform_indices = @transform_17, window_bounds = array<i64: 2, 64, 128>}, {pipeline_mode = #tpu.pipeline_mode<synchronous>, transform_indices = @transform_18, window_bounds = array<i64: 1, 128>}, {pipeline_mode = #tpu.pipeline_mode<synchronous>, transform_indices = @transform_19, window_bounds = array<i64: 8, 128>}]} {
    %c0 = arith.constant 0 : index
    %c0_0 = arith.constant 0 : index
    %0 = vector.load %arg1[%c0, %c0_0] : memref<32x64xbf16, #tpu.memory_space<vmem>>, vector<32x64xbf16>
    %cst = arith.constant 0.000000e+00 : f32
    %1 = vector.broadcast %cst : f32 to vector<16x64xf32>
    %c0_1 = arith.constant 0 : index
    %c0_2 = arith.constant 0 : index
    %c0_3 = arith.constant 0 : index
    %2 = vector.load %arg2[%c0_1, %c0_2, %c0_3] : memref<3x16x32xbf16, #tpu.memory_space<vmem>>, vector<1x16x32xbf16>
    %3 = vector.shape_cast %2 : vector<1x16x32xbf16> to vector<16x32xbf16>
    %cst_4 = arith.constant dense<0.000000e+00> : vector<16x64xf32>
    %4 = tpu.matmul %3, %0, %cst_4 {dimension_numbers = #tpu.dot_dimension_numbers<[1], [0], [0], [1], [0, 0, 1, 1], [], []>} : vector<16x32xbf16>, vector<32x64xbf16>, vector<16x64xf32> -> vector<16x64xf32>
    %5 = arith.truncf %4 : vector<16x64xf32> to vector<16x64xbf16>
    %c0_5 = arith.constant 0 : index
    %c0_6 = arith.constant 0 : index
    %c0_7 = arith.constant 0 : index
    %6 = vector.load %arg3[%c0_5, %c0_6, %c0_7] : memref<9x64x64xbf16, #tpu.memory_space<vmem>>, vector<1x64x64xbf16>
    %7 = vector.shape_cast %6 : vector<1x64x64xbf16> to vector<64x64xbf16>
    %cst_8 = arith.constant dense<0.000000e+00> : vector<16x64xf32>
    %8 = tpu.matmul %5, %7, %cst_8 {dimension_numbers = #tpu.dot_dimension_numbers<[1], [0], [0], [1], [0, 0, 1, 1], [], []>} : vector<16x64xbf16>, vector<64x64xbf16>, vector<16x64xf32> -> vector<16x64xf32>
    %9 = arith.addf %1, %8 : vector<16x64xf32>
    %c1 = arith.constant 1 : index
    %c0_9 = arith.constant 0 : index
    %c0_10 = arith.constant 0 : index
    %10 = vector.load %arg3[%c1, %c0_9, %c0_10] : memref<9x64x64xbf16, #tpu.memory_space<vmem>>, vector<1x64x64xbf16>
    %11 = vector.shape_cast %10 : vector<1x64x64xbf16> to vector<64x64xbf16>
    %cst_11 = arith.constant dense<0.000000e+00> : vector<16x64xf32>
    %12 = tpu.matmul %5, %11, %cst_11 {dimension_numbers = #tpu.dot_dimension_numbers<[1], [0], [0], [1], [0, 0, 1, 1], [], []>} : vector<16x64xbf16>, vector<64x64xbf16>, vector<16x64xf32> -> vector<16x64xf32>
    %13 = arith.addf %9, %12 : vector<16x64xf32>
    %c2 = arith.constant 2 : index
    %c0_12 = arith.constant 0 : index
    %c0_13 = arith.constant 0 : index
    %14 = vector.load %arg3[%c2, %c0_12, %c0_13] : memref<9x64x64xbf16, #tpu.memory_space<vmem>>, vector<1x64x64xbf16>
    %15 = vector.shape_cast %14 : vector<1x64x64xbf16> to vector<64x64xbf16>
    %cst_14 = arith.constant dense<0.000000e+00> : vector<16x64xf32>
    %16 = tpu.matmul %5, %15, %cst_14 {dimension_numbers = #tpu.dot_dimension_numbers<[1], [0], [0], [1], [0, 0, 1, 1], [], []>} : vector<16x64xbf16>, vector<64x64xbf16>, vector<16x64xf32> -> vector<16x64xf32>
    %17 = arith.addf %13, %16 : vector<16x64xf32>
    %c1_15 = arith.constant 1 : index
    %c0_16 = arith.constant 0 : index
    %c0_17 = arith.constant 0 : index
    %18 = vector.load %arg2[%c1_15, %c0_16, %c0_17] : memref<3x16x32xbf16, #tpu.memory_space<vmem>>, vector<1x16x32xbf16>
    %19 = vector.shape_cast %18 : vector<1x16x32xbf16> to vector<16x32xbf16>
    %cst_18 = arith.constant dense<0.000000e+00> : vector<16x64xf32>
    %20 = tpu.matmul %19, %0, %cst_18 {dimension_numbers = #tpu.dot_dimension_numbers<[1], [0], [0], [1], [0, 0, 1, 1], [], []>} : vector<16x32xbf16>, vector<32x64xbf16>, vector<16x64xf32> -> vector<16x64xf32>
    %21 = arith.truncf %20 : vector<16x64xf32> to vector<16x64xbf16>
    %c3 = arith.constant 3 : index
    %c0_19 = arith.constant 0 : index
    %c0_20 = arith.constant 0 : index
    %22 = vector.load %arg3[%c3, %c0_19, %c0_20] : memref<9x64x64xbf16, #tpu.memory_space<vmem>>, vector<1x64x64xbf16>
    %23 = vector.shape_cast %22 : vector<1x64x64xbf16> to vector<64x64xbf16>
    %cst_21 = arith.constant dense<0.000000e+00> : vector<16x64xf32>
    %24 = tpu.matmul %21, %23, %cst_21 {dimension_numbers = #tpu.dot_dimension_numbers<[1], [0], [0], [1], [0, 0, 1, 1], [], []>} : vector<16x64xbf16>, vector<64x64xbf16>, vector<16x64xf32> -> vector<16x64xf32>
    %25 = arith.addf %17, %24 : vector<16x64xf32>
    %c4 = arith.constant 4 : index
    %c0_22 = arith.constant 0 : index
    %c0_23 = arith.constant 0 : index
    %26 = vector.load %arg3[%c4, %c0_22, %c0_23] : memref<9x64x64xbf16, #tpu.memory_space<vmem>>, vector<1x64x64xbf16>
    %27 = vector.shape_cast %26 : vector<1x64x64xbf16> to vector<64x64xbf16>
    %cst_24 = arith.constant dense<0.000000e+00> : vector<16x64xf32>
    %28 = tpu.matmul %21, %27, %cst_24 {dimension_numbers = #tpu.dot_dimension_numbers<[1], [0], [0], [1], [0, 0, 1, 1], [], []>} : vector<16x64xbf16>, vector<64x64xbf16>, vector<16x64xf32> -> vector<16x64xf32>
    %29 = arith.addf %25, %28 : vector<16x64xf32>
    %c5 = arith.constant 5 : index
    %c0_25 = arith.constant 0 : index
    %c0_26 = arith.constant 0 : index
    %30 = vector.load %arg3[%c5, %c0_25, %c0_26] : memref<9x64x64xbf16, #tpu.memory_space<vmem>>, vector<1x64x64xbf16>
    %31 = vector.shape_cast %30 : vector<1x64x64xbf16> to vector<64x64xbf16>
    %cst_27 = arith.constant dense<0.000000e+00> : vector<16x64xf32>
    %32 = tpu.matmul %21, %31, %cst_27 {dimension_numbers = #tpu.dot_dimension_numbers<[1], [0], [0], [1], [0, 0, 1, 1], [], []>} : vector<16x64xbf16>, vector<64x64xbf16>, vector<16x64xf32> -> vector<16x64xf32>
    %33 = arith.addf %29, %32 : vector<16x64xf32>
    %c2_28 = arith.constant 2 : index
    %c0_29 = arith.constant 0 : index
    %c0_30 = arith.constant 0 : index
    %34 = vector.load %arg2[%c2_28, %c0_29, %c0_30] : memref<3x16x32xbf16, #tpu.memory_space<vmem>>, vector<1x16x32xbf16>
    %35 = vector.shape_cast %34 : vector<1x16x32xbf16> to vector<16x32xbf16>
    %cst_31 = arith.constant dense<0.000000e+00> : vector<16x64xf32>
    %36 = tpu.matmul %35, %0, %cst_31 {dimension_numbers = #tpu.dot_dimension_numbers<[1], [0], [0], [1], [0, 0, 1, 1], [], []>} : vector<16x32xbf16>, vector<32x64xbf16>, vector<16x64xf32> -> vector<16x64xf32>
    %37 = arith.truncf %36 : vector<16x64xf32> to vector<16x64xbf16>
    %c6 = arith.constant 6 : index
    %c0_32 = arith.constant 0 : index
    %c0_33 = arith.constant 0 : index
    %38 = vector.load %arg3[%c6, %c0_32, %c0_33] : memref<9x64x64xbf16, #tpu.memory_space<vmem>>, vector<1x64x64xbf16>
    %39 = vector.shape_cast %38 : vector<1x64x64xbf16> to vector<64x64xbf16>
    %cst_34 = arith.constant dense<0.000000e+00> : vector<16x64xf32>
    %40 = tpu.matmul %37, %39, %cst_34 {dimension_numbers = #tpu.dot_dimension_numbers<[1], [0], [0], [1], [0, 0, 1, 1], [], []>} : vector<16x64xbf16>, vector<64x64xbf16>, vector<16x64xf32> -> vector<16x64xf32>
    %41 = arith.addf %33, %40 : vector<16x64xf32>
    %c7 = arith.constant 7 : index
    %c0_35 = arith.constant 0 : index
    %c0_36 = arith.constant 0 : index
    %42 = vector.load %arg3[%c7, %c0_35, %c0_36] : memref<9x64x64xbf16, #tpu.memory_space<vmem>>, vector<1x64x64xbf16>
    %43 = vector.shape_cast %42 : vector<1x64x64xbf16> to vector<64x64xbf16>
    %cst_37 = arith.constant dense<0.000000e+00> : vector<16x64xf32>
    %44 = tpu.matmul %37, %43, %cst_37 {dimension_numbers = #tpu.dot_dimension_numbers<[1], [0], [0], [1], [0, 0, 1, 1], [], []>} : vector<16x64xbf16>, vector<64x64xbf16>, vector<16x64xf32> -> vector<16x64xf32>
    %45 = arith.addf %41, %44 : vector<16x64xf32>
    %c8 = arith.constant 8 : index
    %c0_38 = arith.constant 0 : index
    %c0_39 = arith.constant 0 : index
    %46 = vector.load %arg3[%c8, %c0_38, %c0_39] : memref<9x64x64xbf16, #tpu.memory_space<vmem>>, vector<1x64x64xbf16>
    %47 = vector.shape_cast %46 : vector<1x64x64xbf16> to vector<64x64xbf16>
    %cst_40 = arith.constant dense<0.000000e+00> : vector<16x64xf32>
    %48 = tpu.matmul %37, %47, %cst_40 {dimension_numbers = #tpu.dot_dimension_numbers<[1], [0], [0], [1], [0, 0, 1, 1], [], []>} : vector<16x64xbf16>, vector<64x64xbf16>, vector<16x64xf32> -> vector<16x64xf32>
    %49 = arith.addf %45, %48 : vector<16x64xf32>
    %c0_41 = arith.constant 0 : index
    %c0_42 = arith.constant 0 : index
    %50 = vector.load %arg4[%c0_41, %c0_42] : memref<64x8xf32, #tpu.memory_space<vmem>>, vector<64x8xf32>
    %cst_43 = arith.constant dense<0.000000e+00> : vector<16x8xf32>
    %51 = tpu.matmul %49, %50, %cst_43 {dimension_numbers = #tpu.dot_dimension_numbers<[1], [0], [0], [1], [0, 0, 1, 1], [], []>} : vector<16x64xf32>, vector<64x8xf32>, vector<16x8xf32> -> vector<16x8xf32>
    %cst_44 = arith.constant dense<0.000000e+00> : vector<8xf32>
    %52 = vector.multi_reduction <add>, %51, %cst_44 [0] : vector<16x8xf32> to vector<8xf32>
    %53 = vector.shape_cast %52 : vector<8xf32> to vector<1x8xf32>
    %cst_45 = arith.constant 7.812500e-03 : f32
    %54 = vector.broadcast %cst_45 : f32 to vector<1x8xf32>
    %55 = arith.mulf %53, %54 : vector<1x8xf32>
    %c0_46 = arith.constant 0 : index
    %c0_47 = arith.constant 0 : index
    %56 = vector.load %arg5[%c0_46, %c0_47] : memref<8x64xf32, #tpu.memory_space<vmem>>, vector<8x64xf32>
    %cst_48 = arith.constant dense<0.000000e+00> : vector<1x64xf32>
    %57 = tpu.matmul %55, %56, %cst_48 {dimension_numbers = #tpu.dot_dimension_numbers<[1], [0], [0], [1], [0, 0, 1, 1], [], []>} : vector<1x8xf32>, vector<8x64xf32>, vector<1x64xf32> -> vector<1x64xf32>
    %58 = vector.broadcast %57 : vector<1x64xf32> to vector<16x64xf32>
    %59 = arith.subf %49, %58 : vector<16x64xf32>
    %60 = arith.mulf %59, %59 : vector<16x64xf32>
    %c0_49 = arith.constant 0 : index
    %c0_50 = arith.constant 0 : index
    %61 = vector.load %arg4[%c0_49, %c0_50] : memref<64x8xf32, #tpu.memory_space<vmem>>, vector<64x8xf32>
    %cst_51 = arith.constant dense<0.000000e+00> : vector<16x8xf32>
    %62 = tpu.matmul %60, %61, %cst_51 {dimension_numbers = #tpu.dot_dimension_numbers<[1], [0], [0], [1], [0, 0, 1, 1], [], []>} : vector<16x64xf32>, vector<64x8xf32>, vector<16x8xf32> -> vector<16x8xf32>
    %cst_52 = arith.constant dense<0.000000e+00> : vector<8xf32>
    %63 = vector.multi_reduction <add>, %62, %cst_52 [0] : vector<16x8xf32> to vector<8xf32>
    %64 = vector.shape_cast %63 : vector<8xf32> to vector<1x8xf32>
    %cst_53 = arith.constant 7.812500e-03 : f32
    %65 = vector.broadcast %cst_53 : f32 to vector<1x8xf32>
    %66 = arith.mulf %64, %65 : vector<1x8xf32>
    %c0_54 = arith.constant 0 : index
    %c0_55 = arith.constant 0 : index
    %67 = vector.load %arg6[%c0_54, %c0_55] : memref<2x8xf32, #tpu.memory_space<vmem>>, vector<1x8xf32>
    %c1_56 = arith.constant 1 : index
    %c0_57 = arith.constant 0 : index
    %68 = vector.load %arg6[%c1_56, %c0_57] : memref<2x8xf32, #tpu.memory_space<vmem>>, vector<1x8xf32>
    %cst_58 = arith.constant 9.99999974E-6 : f32
    %69 = vector.broadcast %cst_58 : f32 to vector<1x8xf32>
    %70 = arith.addf %66, %69 : vector<1x8xf32>
    %71 = math.rsqrt %70 : vector<1x8xf32>
    %72 = arith.mulf %67, %71 : vector<1x8xf32>
    %c0_59 = arith.constant 0 : index
    %c0_60 = arith.constant 0 : index
    %73 = vector.load %arg5[%c0_59, %c0_60] : memref<8x64xf32, #tpu.memory_space<vmem>>, vector<8x64xf32>
    %cst_61 = arith.constant dense<0.000000e+00> : vector<1x64xf32>
    %74 = tpu.matmul %72, %73, %cst_61 {dimension_numbers = #tpu.dot_dimension_numbers<[1], [0], [0], [1], [0, 0, 1, 1], [], []>} : vector<1x8xf32>, vector<8x64xf32>, vector<1x64xf32> -> vector<1x64xf32>
    %c0_62 = arith.constant 0 : index
    %c0_63 = arith.constant 0 : index
    %75 = vector.load %arg5[%c0_62, %c0_63] : memref<8x64xf32, #tpu.memory_space<vmem>>, vector<8x64xf32>
    %cst_64 = arith.constant dense<0.000000e+00> : vector<1x64xf32>
    %76 = tpu.matmul %68, %75, %cst_64 {dimension_numbers = #tpu.dot_dimension_numbers<[1], [0], [0], [1], [0, 0, 1, 1], [], []>} : vector<1x8xf32>, vector<8x64xf32>, vector<1x64xf32> -> vector<1x64xf32>
    %77 = vector.broadcast %74 : vector<1x64xf32> to vector<16x64xf32>
    %78 = arith.mulf %59, %77 : vector<16x64xf32>
    %79 = vector.broadcast %76 : vector<1x64xf32> to vector<16x64xf32>
    %80 = arith.addf %78, %79 : vector<16x64xf32>
    %cst_65 = arith.constant 0.000000e+00 : f32
    %81 = vector.broadcast %cst_65 : f32 to vector<16x64xf32>
    %82 = arith.maximumf %80, %81 : vector<16x64xf32>
    %83 = arith.truncf %82 : vector<16x64xf32> to vector<16x64xbf16>
    %cst_66 = arith.constant 0.000000e+00 : f32
    %84 = vector.broadcast %cst_66 : f32 to vector<8x64xf32>
    %c0_67 = arith.constant 0 : index
    %c0_68 = arith.constant 0 : index
    %c0_69 = arith.constant 0 : index
    %85 = vector.load %arg7[%c0_67, %c0_68, %c0_69] : memref<3x8x16xbf16, #tpu.memory_space<vmem>>, vector<1x8x16xbf16>
    %86 = vector.shape_cast %85 : vector<1x8x16xbf16> to vector<8x16xbf16>
    %cst_70 = arith.constant dense<0.000000e+00> : vector<8x64xf32>
    %87 = tpu.matmul %86, %83, %cst_70 {dimension_numbers = #tpu.dot_dimension_numbers<[1], [0], [0], [1], [0, 0, 1, 1], [], []>} : vector<8x16xbf16>, vector<16x64xbf16>, vector<8x64xf32> -> vector<8x64xf32>
    %88 = arith.truncf %87 : vector<8x64xf32> to vector<8x64xbf16>
    %c0_71 = arith.constant 0 : index
    %c0_72 = arith.constant 0 : index
    %c0_73 = arith.constant 0 : index
    %89 = vector.load %arg8[%c0_71, %c0_72, %c0_73] : memref<9x64x64xbf16, #tpu.memory_space<vmem>>, vector<1x64x64xbf16>
    %90 = vector.shape_cast %89 : vector<1x64x64xbf16> to vector<64x64xbf16>
    %cst_74 = arith.constant dense<0.000000e+00> : vector<8x64xf32>
    %91 = tpu.matmul %88, %90, %cst_74 {dimension_numbers = #tpu.dot_dimension_numbers<[1], [0], [0], [1], [0, 0, 1, 1], [], []>} : vector<8x64xbf16>, vector<64x64xbf16>, vector<8x64xf32> -> vector<8x64xf32>
    %92 = arith.addf %84, %91 : vector<8x64xf32>
    %c1_75 = arith.constant 1 : index
    %c0_76 = arith.constant 0 : index
    %c0_77 = arith.constant 0 : index
    %93 = vector.load %arg8[%c1_75, %c0_76, %c0_77] : memref<9x64x64xbf16, #tpu.memory_space<vmem>>, vector<1x64x64xbf16>
    %94 = vector.shape_cast %93 : vector<1x64x64xbf16> to vector<64x64xbf16>
    %cst_78 = arith.constant dense<0.000000e+00> : vector<8x64xf32>
    %95 = tpu.matmul %88, %94, %cst_78 {dimension_numbers = #tpu.dot_dimension_numbers<[1], [0], [0], [1], [0, 0, 1, 1], [], []>} : vector<8x64xbf16>, vector<64x64xbf16>, vector<8x64xf32> -> vector<8x64xf32>
    %96 = arith.addf %92, %95 : vector<8x64xf32>
    %c2_79 = arith.constant 2 : index
    %c0_80 = arith.constant 0 : index
    %c0_81 = arith.constant 0 : index
    %97 = vector.load %arg8[%c2_79, %c0_80, %c0_81] : memref<9x64x64xbf16, #tpu.memory_space<vmem>>, vector<1x64x64xbf16>
    %98 = vector.shape_cast %97 : vector<1x64x64xbf16> to vector<64x64xbf16>
    %cst_82 = arith.constant dense<0.000000e+00> : vector<8x64xf32>
    %99 = tpu.matmul %88, %98, %cst_82 {dimension_numbers = #tpu.dot_dimension_numbers<[1], [0], [0], [1], [0, 0, 1, 1], [], []>} : vector<8x64xbf16>, vector<64x64xbf16>, vector<8x64xf32> -> vector<8x64xf32>
    %100 = arith.addf %96, %99 : vector<8x64xf32>
    %c1_83 = arith.constant 1 : index
    %c0_84 = arith.constant 0 : index
    %c0_85 = arith.constant 0 : index
    %101 = vector.load %arg7[%c1_83, %c0_84, %c0_85] : memref<3x8x16xbf16, #tpu.memory_space<vmem>>, vector<1x8x16xbf16>
    %102 = vector.shape_cast %101 : vector<1x8x16xbf16> to vector<8x16xbf16>
    %cst_86 = arith.constant dense<0.000000e+00> : vector<8x64xf32>
    %103 = tpu.matmul %102, %83, %cst_86 {dimension_numbers = #tpu.dot_dimension_numbers<[1], [0], [0], [1], [0, 0, 1, 1], [], []>} : vector<8x16xbf16>, vector<16x64xbf16>, vector<8x64xf32> -> vector<8x64xf32>
    %104 = arith.truncf %103 : vector<8x64xf32> to vector<8x64xbf16>
    %c3_87 = arith.constant 3 : index
    %c0_88 = arith.constant 0 : index
    %c0_89 = arith.constant 0 : index
    %105 = vector.load %arg8[%c3_87, %c0_88, %c0_89] : memref<9x64x64xbf16, #tpu.memory_space<vmem>>, vector<1x64x64xbf16>
    %106 = vector.shape_cast %105 : vector<1x64x64xbf16> to vector<64x64xbf16>
    %cst_90 = arith.constant dense<0.000000e+00> : vector<8x64xf32>
    %107 = tpu.matmul %104, %106, %cst_90 {dimension_numbers = #tpu.dot_dimension_numbers<[1], [0], [0], [1], [0, 0, 1, 1], [], []>} : vector<8x64xbf16>, vector<64x64xbf16>, vector<8x64xf32> -> vector<8x64xf32>
    %108 = arith.addf %100, %107 : vector<8x64xf32>
    %c4_91 = arith.constant 4 : index
    %c0_92 = arith.constant 0 : index
    %c0_93 = arith.constant 0 : index
    %109 = vector.load %arg8[%c4_91, %c0_92, %c0_93] : memref<9x64x64xbf16, #tpu.memory_space<vmem>>, vector<1x64x64xbf16>
    %110 = vector.shape_cast %109 : vector<1x64x64xbf16> to vector<64x64xbf16>
    %cst_94 = arith.constant dense<0.000000e+00> : vector<8x64xf32>
    %111 = tpu.matmul %104, %110, %cst_94 {dimension_numbers = #tpu.dot_dimension_numbers<[1], [0], [0], [1], [0, 0, 1, 1], [], []>} : vector<8x64xbf16>, vector<64x64xbf16>, vector<8x64xf32> -> vector<8x64xf32>
    %112 = arith.addf %108, %111 : vector<8x64xf32>
    %c5_95 = arith.constant 5 : index
    %c0_96 = arith.constant 0 : index
    %c0_97 = arith.constant 0 : index
    %113 = vector.load %arg8[%c5_95, %c0_96, %c0_97] : memref<9x64x64xbf16, #tpu.memory_space<vmem>>, vector<1x64x64xbf16>
    %114 = vector.shape_cast %113 : vector<1x64x64xbf16> to vector<64x64xbf16>
    %cst_98 = arith.constant dense<0.000000e+00> : vector<8x64xf32>
    %115 = tpu.matmul %104, %114, %cst_98 {dimension_numbers = #tpu.dot_dimension_numbers<[1], [0], [0], [1], [0, 0, 1, 1], [], []>} : vector<8x64xbf16>, vector<64x64xbf16>, vector<8x64xf32> -> vector<8x64xf32>
    %116 = arith.addf %112, %115 : vector<8x64xf32>
    %c2_99 = arith.constant 2 : index
    %c0_100 = arith.constant 0 : index
    %c0_101 = arith.constant 0 : index
    %117 = vector.load %arg7[%c2_99, %c0_100, %c0_101] : memref<3x8x16xbf16, #tpu.memory_space<vmem>>, vector<1x8x16xbf16>
    %118 = vector.shape_cast %117 : vector<1x8x16xbf16> to vector<8x16xbf16>
    %cst_102 = arith.constant dense<0.000000e+00> : vector<8x64xf32>
    %119 = tpu.matmul %118, %83, %cst_102 {dimension_numbers = #tpu.dot_dimension_numbers<[1], [0], [0], [1], [0, 0, 1, 1], [], []>} : vector<8x16xbf16>, vector<16x64xbf16>, vector<8x64xf32> -> vector<8x64xf32>
    %120 = arith.truncf %119 : vector<8x64xf32> to vector<8x64xbf16>
    %c6_103 = arith.constant 6 : index
    %c0_104 = arith.constant 0 : index
    %c0_105 = arith.constant 0 : index
    %121 = vector.load %arg8[%c6_103, %c0_104, %c0_105] : memref<9x64x64xbf16, #tpu.memory_space<vmem>>, vector<1x64x64xbf16>
    %122 = vector.shape_cast %121 : vector<1x64x64xbf16> to vector<64x64xbf16>
    %cst_106 = arith.constant dense<0.000000e+00> : vector<8x64xf32>
    %123 = tpu.matmul %120, %122, %cst_106 {dimension_numbers = #tpu.dot_dimension_numbers<[1], [0], [0], [1], [0, 0, 1, 1], [], []>} : vector<8x64xbf16>, vector<64x64xbf16>, vector<8x64xf32> -> vector<8x64xf32>
    %124 = arith.addf %116, %123 : vector<8x64xf32>
    %c7_107 = arith.constant 7 : index
    %c0_108 = arith.constant 0 : index
    %c0_109 = arith.constant 0 : index
    %125 = vector.load %arg8[%c7_107, %c0_108, %c0_109] : memref<9x64x64xbf16, #tpu.memory_space<vmem>>, vector<1x64x64xbf16>
    %126 = vector.shape_cast %125 : vector<1x64x64xbf16> to vector<64x64xbf16>
    %cst_110 = arith.constant dense<0.000000e+00> : vector<8x64xf32>
    %127 = tpu.matmul %120, %126, %cst_110 {dimension_numbers = #tpu.dot_dimension_numbers<[1], [0], [0], [1], [0, 0, 1, 1], [], []>} : vector<8x64xbf16>, vector<64x64xbf16>, vector<8x64xf32> -> vector<8x64xf32>
    %128 = arith.addf %124, %127 : vector<8x64xf32>
    %c8_111 = arith.constant 8 : index
    %c0_112 = arith.constant 0 : index
    %c0_113 = arith.constant 0 : index
    %129 = vector.load %arg8[%c8_111, %c0_112, %c0_113] : memref<9x64x64xbf16, #tpu.memory_space<vmem>>, vector<1x64x64xbf16>
    %130 = vector.shape_cast %129 : vector<1x64x64xbf16> to vector<64x64xbf16>
    %cst_114 = arith.constant dense<0.000000e+00> : vector<8x64xf32>
    %131 = tpu.matmul %120, %130, %cst_114 {dimension_numbers = #tpu.dot_dimension_numbers<[1], [0], [0], [1], [0, 0, 1, 1], [], []>} : vector<8x64xbf16>, vector<64x64xbf16>, vector<8x64xf32> -> vector<8x64xf32>
    %132 = arith.addf %128, %131 : vector<8x64xf32>
    %c0_115 = arith.constant 0 : index
    %c0_116 = arith.constant 0 : index
    %133 = vector.load %arg9[%c0_115, %c0_116] : memref<64x16xf32, #tpu.memory_space<vmem>>, vector<64x16xf32>
    %cst_117 = arith.constant dense<0.000000e+00> : vector<8x16xf32>
    %134 = tpu.matmul %132, %133, %cst_117 {dimension_numbers = #tpu.dot_dimension_numbers<[1], [0], [0], [1], [0, 0, 1, 1], [], []>} : vector<8x64xf32>, vector<64x16xf32>, vector<8x16xf32> -> vector<8x16xf32>
    %cst_118 = arith.constant dense<0.000000e+00> : vector<16xf32>
    %135 = vector.multi_reduction <add>, %134, %cst_118 [0] : vector<8x16xf32> to vector<16xf32>
    %136 = vector.shape_cast %135 : vector<16xf32> to vector<1x16xf32>
    %cst_119 = arith.constant 3.125000e-02 : f32
    %137 = vector.broadcast %cst_119 : f32 to vector<1x16xf32>
    %138 = arith.mulf %136, %137 : vector<1x16xf32>
    %c0_120 = arith.constant 0 : index
    %c0_121 = arith.constant 0 : index
    %139 = vector.load %arg10[%c0_120, %c0_121] : memref<16x64xf32, #tpu.memory_space<vmem>>, vector<16x64xf32>
    %cst_122 = arith.constant dense<0.000000e+00> : vector<1x64xf32>
    %140 = tpu.matmul %138, %139, %cst_122 {dimension_numbers = #tpu.dot_dimension_numbers<[1], [0], [0], [1], [0, 0, 1, 1], [], []>} : vector<1x16xf32>, vector<16x64xf32>, vector<1x64xf32> -> vector<1x64xf32>
    %141 = vector.broadcast %140 : vector<1x64xf32> to vector<8x64xf32>
    %142 = arith.subf %132, %141 : vector<8x64xf32>
    %143 = arith.mulf %142, %142 : vector<8x64xf32>
    %c0_123 = arith.constant 0 : index
    %c0_124 = arith.constant 0 : index
    %144 = vector.load %arg9[%c0_123, %c0_124] : memref<64x16xf32, #tpu.memory_space<vmem>>, vector<64x16xf32>
    %cst_125 = arith.constant dense<0.000000e+00> : vector<8x16xf32>
    %145 = tpu.matmul %143, %144, %cst_125 {dimension_numbers = #tpu.dot_dimension_numbers<[1], [0], [0], [1], [0, 0, 1, 1], [], []>} : vector<8x64xf32>, vector<64x16xf32>, vector<8x16xf32> -> vector<8x16xf32>
    %cst_126 = arith.constant dense<0.000000e+00> : vector<16xf32>
    %146 = vector.multi_reduction <add>, %145, %cst_126 [0] : vector<8x16xf32> to vector<16xf32>
    %147 = vector.shape_cast %146 : vector<16xf32> to vector<1x16xf32>
    %cst_127 = arith.constant 3.125000e-02 : f32
    %148 = vector.broadcast %cst_127 : f32 to vector<1x16xf32>
    %149 = arith.mulf %147, %148 : vector<1x16xf32>
    %c0_128 = arith.constant 0 : index
    %c0_129 = arith.constant 0 : index
    %150 = vector.load %arg11[%c0_128, %c0_129] : memref<2x16xf32, #tpu.memory_space<vmem>>, vector<1x16xf32>
    %c1_130 = arith.constant 1 : index
    %c0_131 = arith.constant 0 : index
    %151 = vector.load %arg11[%c1_130, %c0_131] : memref<2x16xf32, #tpu.memory_space<vmem>>, vector<1x16xf32>
    %cst_132 = arith.constant 9.99999974E-6 : f32
    %152 = vector.broadcast %cst_132 : f32 to vector<1x16xf32>
    %153 = arith.addf %149, %152 : vector<1x16xf32>
    %154 = math.rsqrt %153 : vector<1x16xf32>
    %155 = arith.mulf %150, %154 : vector<1x16xf32>
    %c0_133 = arith.constant 0 : index
    %c0_134 = arith.constant 0 : index
    %156 = vector.load %arg10[%c0_133, %c0_134] : memref<16x64xf32, #tpu.memory_space<vmem>>, vector<16x64xf32>
    %cst_135 = arith.constant dense<0.000000e+00> : vector<1x64xf32>
    %157 = tpu.matmul %155, %156, %cst_135 {dimension_numbers = #tpu.dot_dimension_numbers<[1], [0], [0], [1], [0, 0, 1, 1], [], []>} : vector<1x16xf32>, vector<16x64xf32>, vector<1x64xf32> -> vector<1x64xf32>
    %c0_136 = arith.constant 0 : index
    %c0_137 = arith.constant 0 : index
    %158 = vector.load %arg10[%c0_136, %c0_137] : memref<16x64xf32, #tpu.memory_space<vmem>>, vector<16x64xf32>
    %cst_138 = arith.constant dense<0.000000e+00> : vector<1x64xf32>
    %159 = tpu.matmul %151, %158, %cst_138 {dimension_numbers = #tpu.dot_dimension_numbers<[1], [0], [0], [1], [0, 0, 1, 1], [], []>} : vector<1x16xf32>, vector<16x64xf32>, vector<1x64xf32> -> vector<1x64xf32>
    %160 = vector.broadcast %157 : vector<1x64xf32> to vector<8x64xf32>
    %161 = arith.mulf %142, %160 : vector<8x64xf32>
    %162 = vector.broadcast %159 : vector<1x64xf32> to vector<8x64xf32>
    %163 = arith.addf %161, %162 : vector<8x64xf32>
    %cst_139 = arith.constant 0.000000e+00 : f32
    %164 = vector.broadcast %cst_139 : f32 to vector<8x64xf32>
    %165 = arith.maximumf %163, %164 : vector<8x64xf32>
    %166 = arith.truncf %165 : vector<8x64xf32> to vector<8x64xbf16>
    %cst_140 = arith.constant 0.000000e+00 : f32
    %167 = vector.broadcast %cst_140 : f32 to vector<4x64xf32>
    %c0_141 = arith.constant 0 : index
    %c0_142 = arith.constant 0 : index
    %c0_143 = arith.constant 0 : index
    %168 = vector.load %arg12[%c0_141, %c0_142, %c0_143] : memref<3x4x8xbf16, #tpu.memory_space<vmem>>, vector<1x4x8xbf16>
    %169 = vector.shape_cast %168 : vector<1x4x8xbf16> to vector<4x8xbf16>
    %cst_144 = arith.constant dense<0.000000e+00> : vector<4x64xf32>
    %170 = tpu.matmul %169, %166, %cst_144 {dimension_numbers = #tpu.dot_dimension_numbers<[1], [0], [0], [1], [0, 0, 1, 1], [], []>} : vector<4x8xbf16>, vector<8x64xbf16>, vector<4x64xf32> -> vector<4x64xf32>
    %171 = arith.truncf %170 : vector<4x64xf32> to vector<4x64xbf16>
    %c0_145 = arith.constant 0 : index
    %c0_146 = arith.constant 0 : index
    %c0_147 = arith.constant 0 : index
    %172 = vector.load %arg13[%c0_145, %c0_146, %c0_147] : memref<9x64x64xbf16, #tpu.memory_space<vmem>>, vector<1x64x64xbf16>
    %173 = vector.shape_cast %172 : vector<1x64x64xbf16> to vector<64x64xbf16>
    %cst_148 = arith.constant dense<0.000000e+00> : vector<4x64xf32>
    %174 = tpu.matmul %171, %173, %cst_148 {dimension_numbers = #tpu.dot_dimension_numbers<[1], [0], [0], [1], [0, 0, 1, 1], [], []>} : vector<4x64xbf16>, vector<64x64xbf16>, vector<4x64xf32> -> vector<4x64xf32>
    %175 = arith.addf %167, %174 : vector<4x64xf32>
    %c1_149 = arith.constant 1 : index
    %c0_150 = arith.constant 0 : index
    %c0_151 = arith.constant 0 : index
    %176 = vector.load %arg13[%c1_149, %c0_150, %c0_151] : memref<9x64x64xbf16, #tpu.memory_space<vmem>>, vector<1x64x64xbf16>
    %177 = vector.shape_cast %176 : vector<1x64x64xbf16> to vector<64x64xbf16>
    %cst_152 = arith.constant dense<0.000000e+00> : vector<4x64xf32>
    %178 = tpu.matmul %171, %177, %cst_152 {dimension_numbers = #tpu.dot_dimension_numbers<[1], [0], [0], [1], [0, 0, 1, 1], [], []>} : vector<4x64xbf16>, vector<64x64xbf16>, vector<4x64xf32> -> vector<4x64xf32>
    %179 = arith.addf %175, %178 : vector<4x64xf32>
    %c2_153 = arith.constant 2 : index
    %c0_154 = arith.constant 0 : index
    %c0_155 = arith.constant 0 : index
    %180 = vector.load %arg13[%c2_153, %c0_154, %c0_155] : memref<9x64x64xbf16, #tpu.memory_space<vmem>>, vector<1x64x64xbf16>
    %181 = vector.shape_cast %180 : vector<1x64x64xbf16> to vector<64x64xbf16>
    %cst_156 = arith.constant dense<0.000000e+00> : vector<4x64xf32>
    %182 = tpu.matmul %171, %181, %cst_156 {dimension_numbers = #tpu.dot_dimension_numbers<[1], [0], [0], [1], [0, 0, 1, 1], [], []>} : vector<4x64xbf16>, vector<64x64xbf16>, vector<4x64xf32> -> vector<4x64xf32>
    %183 = arith.addf %179, %182 : vector<4x64xf32>
    %c1_157 = arith.constant 1 : index
    %c0_158 = arith.constant 0 : index
    %c0_159 = arith.constant 0 : index
    %184 = vector.load %arg12[%c1_157, %c0_158, %c0_159] : memref<3x4x8xbf16, #tpu.memory_space<vmem>>, vector<1x4x8xbf16>
    %185 = vector.shape_cast %184 : vector<1x4x8xbf16> to vector<4x8xbf16>
    %cst_160 = arith.constant dense<0.000000e+00> : vector<4x64xf32>
    %186 = tpu.matmul %185, %166, %cst_160 {dimension_numbers = #tpu.dot_dimension_numbers<[1], [0], [0], [1], [0, 0, 1, 1], [], []>} : vector<4x8xbf16>, vector<8x64xbf16>, vector<4x64xf32> -> vector<4x64xf32>
    %187 = arith.truncf %186 : vector<4x64xf32> to vector<4x64xbf16>
    %c3_161 = arith.constant 3 : index
    %c0_162 = arith.constant 0 : index
    %c0_163 = arith.constant 0 : index
    %188 = vector.load %arg13[%c3_161, %c0_162, %c0_163] : memref<9x64x64xbf16, #tpu.memory_space<vmem>>, vector<1x64x64xbf16>
    %189 = vector.shape_cast %188 : vector<1x64x64xbf16> to vector<64x64xbf16>
    %cst_164 = arith.constant dense<0.000000e+00> : vector<4x64xf32>
    %190 = tpu.matmul %187, %189, %cst_164 {dimension_numbers = #tpu.dot_dimension_numbers<[1], [0], [0], [1], [0, 0, 1, 1], [], []>} : vector<4x64xbf16>, vector<64x64xbf16>, vector<4x64xf32> -> vector<4x64xf32>
    %191 = arith.addf %183, %190 : vector<4x64xf32>
    %c4_165 = arith.constant 4 : index
    %c0_166 = arith.constant 0 : index
    %c0_167 = arith.constant 0 : index
    %192 = vector.load %arg13[%c4_165, %c0_166, %c0_167] : memref<9x64x64xbf16, #tpu.memory_space<vmem>>, vector<1x64x64xbf16>
    %193 = vector.shape_cast %192 : vector<1x64x64xbf16> to vector<64x64xbf16>
    %cst_168 = arith.constant dense<0.000000e+00> : vector<4x64xf32>
    %194 = tpu.matmul %187, %193, %cst_168 {dimension_numbers = #tpu.dot_dimension_numbers<[1], [0], [0], [1], [0, 0, 1, 1], [], []>} : vector<4x64xbf16>, vector<64x64xbf16>, vector<4x64xf32> -> vector<4x64xf32>
    %195 = arith.addf %191, %194 : vector<4x64xf32>
    %c5_169 = arith.constant 5 : index
    %c0_170 = arith.constant 0 : index
    %c0_171 = arith.constant 0 : index
    %196 = vector.load %arg13[%c5_169, %c0_170, %c0_171] : memref<9x64x64xbf16, #tpu.memory_space<vmem>>, vector<1x64x64xbf16>
    %197 = vector.shape_cast %196 : vector<1x64x64xbf16> to vector<64x64xbf16>
    %cst_172 = arith.constant dense<0.000000e+00> : vector<4x64xf32>
    %198 = tpu.matmul %187, %197, %cst_172 {dimension_numbers = #tpu.dot_dimension_numbers<[1], [0], [0], [1], [0, 0, 1, 1], [], []>} : vector<4x64xbf16>, vector<64x64xbf16>, vector<4x64xf32> -> vector<4x64xf32>
    %199 = arith.addf %195, %198 : vector<4x64xf32>
    %c2_173 = arith.constant 2 : index
    %c0_174 = arith.constant 0 : index
    %c0_175 = arith.constant 0 : index
    %200 = vector.load %arg12[%c2_173, %c0_174, %c0_175] : memref<3x4x8xbf16, #tpu.memory_space<vmem>>, vector<1x4x8xbf16>
    %201 = vector.shape_cast %200 : vector<1x4x8xbf16> to vector<4x8xbf16>
    %cst_176 = arith.constant dense<0.000000e+00> : vector<4x64xf32>
    %202 = tpu.matmul %201, %166, %cst_176 {dimension_numbers = #tpu.dot_dimension_numbers<[1], [0], [0], [1], [0, 0, 1, 1], [], []>} : vector<4x8xbf16>, vector<8x64xbf16>, vector<4x64xf32> -> vector<4x64xf32>
    %203 = arith.truncf %202 : vector<4x64xf32> to vector<4x64xbf16>
    %c6_177 = arith.constant 6 : index
    %c0_178 = arith.constant 0 : index
    %c0_179 = arith.constant 0 : index
    %204 = vector.load %arg13[%c6_177, %c0_178, %c0_179] : memref<9x64x64xbf16, #tpu.memory_space<vmem>>, vector<1x64x64xbf16>
    %205 = vector.shape_cast %204 : vector<1x64x64xbf16> to vector<64x64xbf16>
    %cst_180 = arith.constant dense<0.000000e+00> : vector<4x64xf32>
    %206 = tpu.matmul %203, %205, %cst_180 {dimension_numbers = #tpu.dot_dimension_numbers<[1], [0], [0], [1], [0, 0, 1, 1], [], []>} : vector<4x64xbf16>, vector<64x64xbf16>, vector<4x64xf32> -> vector<4x64xf32>
    %207 = arith.addf %199, %206 : vector<4x64xf32>
    %c7_181 = arith.constant 7 : index
    %c0_182 = arith.constant 0 : index
    %c0_183 = arith.constant 0 : index
    %208 = vector.load %arg13[%c7_181, %c0_182, %c0_183] : memref<9x64x64xbf16, #tpu.memory_space<vmem>>, vector<1x64x64xbf16>
    %209 = vector.shape_cast %208 : vector<1x64x64xbf16> to vector<64x64xbf16>
    %cst_184 = arith.constant dense<0.000000e+00> : vector<4x64xf32>
    %210 = tpu.matmul %203, %209, %cst_184 {dimension_numbers = #tpu.dot_dimension_numbers<[1], [0], [0], [1], [0, 0, 1, 1], [], []>} : vector<4x64xbf16>, vector<64x64xbf16>, vector<4x64xf32> -> vector<4x64xf32>
    %211 = arith.addf %207, %210 : vector<4x64xf32>
    %c8_185 = arith.constant 8 : index
    %c0_186 = arith.constant 0 : index
    %c0_187 = arith.constant 0 : index
    %212 = vector.load %arg13[%c8_185, %c0_186, %c0_187] : memref<9x64x64xbf16, #tpu.memory_space<vmem>>, vector<1x64x64xbf16>
    %213 = vector.shape_cast %212 : vector<1x64x64xbf16> to vector<64x64xbf16>
    %cst_188 = arith.constant dense<0.000000e+00> : vector<4x64xf32>
    %214 = tpu.matmul %203, %213, %cst_188 {dimension_numbers = #tpu.dot_dimension_numbers<[1], [0], [0], [1], [0, 0, 1, 1], [], []>} : vector<4x64xbf16>, vector<64x64xbf16>, vector<4x64xf32> -> vector<4x64xf32>
    %215 = arith.addf %211, %214 : vector<4x64xf32>
    %c0_189 = arith.constant 0 : index
    %c0_190 = arith.constant 0 : index
    %216 = vector.load %arg14[%c0_189, %c0_190] : memref<64x32xf32, #tpu.memory_space<vmem>>, vector<64x32xf32>
    %cst_191 = arith.constant dense<0.000000e+00> : vector<4x32xf32>
    %217 = tpu.matmul %215, %216, %cst_191 {dimension_numbers = #tpu.dot_dimension_numbers<[1], [0], [0], [1], [0, 0, 1, 1], [], []>} : vector<4x64xf32>, vector<64x32xf32>, vector<4x32xf32> -> vector<4x32xf32>
    %cst_192 = arith.constant dense<0.000000e+00> : vector<32xf32>
    %218 = vector.multi_reduction <add>, %217, %cst_192 [0] : vector<4x32xf32> to vector<32xf32>
    %219 = vector.shape_cast %218 : vector<32xf32> to vector<1x32xf32>
    %cst_193 = arith.constant 1.250000e-01 : f32
    %220 = vector.broadcast %cst_193 : f32 to vector<1x32xf32>
    %221 = arith.mulf %219, %220 : vector<1x32xf32>
    %c0_194 = arith.constant 0 : index
    %c0_195 = arith.constant 0 : index
    %222 = vector.load %arg15[%c0_194, %c0_195] : memref<32x64xf32, #tpu.memory_space<vmem>>, vector<32x64xf32>
    %cst_196 = arith.constant dense<0.000000e+00> : vector<1x64xf32>
    %223 = tpu.matmul %221, %222, %cst_196 {dimension_numbers = #tpu.dot_dimension_numbers<[1], [0], [0], [1], [0, 0, 1, 1], [], []>} : vector<1x32xf32>, vector<32x64xf32>, vector<1x64xf32> -> vector<1x64xf32>
    %224 = vector.broadcast %223 : vector<1x64xf32> to vector<4x64xf32>
    %225 = arith.subf %215, %224 : vector<4x64xf32>
    %226 = arith.mulf %225, %225 : vector<4x64xf32>
    %c0_197 = arith.constant 0 : index
    %c0_198 = arith.constant 0 : index
    %227 = vector.load %arg14[%c0_197, %c0_198] : memref<64x32xf32, #tpu.memory_space<vmem>>, vector<64x32xf32>
    %cst_199 = arith.constant dense<0.000000e+00> : vector<4x32xf32>
    %228 = tpu.matmul %226, %227, %cst_199 {dimension_numbers = #tpu.dot_dimension_numbers<[1], [0], [0], [1], [0, 0, 1, 1], [], []>} : vector<4x64xf32>, vector<64x32xf32>, vector<4x32xf32> -> vector<4x32xf32>
    %cst_200 = arith.constant dense<0.000000e+00> : vector<32xf32>
    %229 = vector.multi_reduction <add>, %228, %cst_200 [0] : vector<4x32xf32> to vector<32xf32>
    %230 = vector.shape_cast %229 : vector<32xf32> to vector<1x32xf32>
    %cst_201 = arith.constant 1.250000e-01 : f32
    %231 = vector.broadcast %cst_201 : f32 to vector<1x32xf32>
    %232 = arith.mulf %230, %231 : vector<1x32xf32>
    %c0_202 = arith.constant 0 : index
    %c0_203 = arith.constant 0 : index
    %233 = vector.load %arg16[%c0_202, %c0_203] : memref<2x32xf32, #tpu.memory_space<vmem>>, vector<1x32xf32>
    %c1_204 = arith.constant 1 : index
    %c0_205 = arith.constant 0 : index
    %234 = vector.load %arg16[%c1_204, %c0_205] : memref<2x32xf32, #tpu.memory_space<vmem>>, vector<1x32xf32>
    %cst_206 = arith.constant 9.99999974E-6 : f32
    %235 = vector.broadcast %cst_206 : f32 to vector<1x32xf32>
    %236 = arith.addf %232, %235 : vector<1x32xf32>
    %237 = math.rsqrt %236 : vector<1x32xf32>
    %238 = arith.mulf %233, %237 : vector<1x32xf32>
    %c0_207 = arith.constant 0 : index
    %c0_208 = arith.constant 0 : index
    %239 = vector.load %arg15[%c0_207, %c0_208] : memref<32x64xf32, #tpu.memory_space<vmem>>, vector<32x64xf32>
    %cst_209 = arith.constant dense<0.000000e+00> : vector<1x64xf32>
    %240 = tpu.matmul %238, %239, %cst_209 {dimension_numbers = #tpu.dot_dimension_numbers<[1], [0], [0], [1], [0, 0, 1, 1], [], []>} : vector<1x32xf32>, vector<32x64xf32>, vector<1x64xf32> -> vector<1x64xf32>
    %c0_210 = arith.constant 0 : index
    %c0_211 = arith.constant 0 : index
    %241 = vector.load %arg15[%c0_210, %c0_211] : memref<32x64xf32, #tpu.memory_space<vmem>>, vector<32x64xf32>
    %cst_212 = arith.constant dense<0.000000e+00> : vector<1x64xf32>
    %242 = tpu.matmul %234, %241, %cst_212 {dimension_numbers = #tpu.dot_dimension_numbers<[1], [0], [0], [1], [0, 0, 1, 1], [], []>} : vector<1x32xf32>, vector<32x64xf32>, vector<1x64xf32> -> vector<1x64xf32>
    %243 = vector.broadcast %240 : vector<1x64xf32> to vector<4x64xf32>
    %244 = arith.mulf %225, %243 : vector<4x64xf32>
    %245 = vector.broadcast %242 : vector<1x64xf32> to vector<4x64xf32>
    %246 = arith.addf %244, %245 : vector<4x64xf32>
    %cst_213 = arith.constant 0.000000e+00 : f32
    %247 = vector.broadcast %cst_213 : f32 to vector<4x64xf32>
    %248 = arith.maximumf %246, %247 : vector<4x64xf32>
    %249 = arith.truncf %248 : vector<4x64xf32> to vector<4x64xbf16>
    %cst_214 = arith.constant 0.000000e+00 : f32
    %250 = vector.broadcast %cst_214 : f32 to vector<8x128xf32>
    %c0_215 = arith.constant 0 : index
    %c0_216 = arith.constant 0 : index
    %c0_217 = arith.constant 0 : index
    %251 = vector.load %arg17[%c0_215, %c0_216, %c0_217] : memref<2x8x4xbf16, #tpu.memory_space<vmem>>, vector<1x8x4xbf16>
    %252 = vector.shape_cast %251 : vector<1x8x4xbf16> to vector<8x4xbf16>
    %cst_218 = arith.constant dense<0.000000e+00> : vector<8x64xf32>
    %253 = tpu.matmul %252, %249, %cst_218 {dimension_numbers = #tpu.dot_dimension_numbers<[1], [0], [0], [1], [0, 0, 1, 1], [], []>} : vector<8x4xbf16>, vector<4x64xbf16>, vector<8x64xf32> -> vector<8x64xf32>
    %254 = arith.truncf %253 : vector<8x64xf32> to vector<8x64xbf16>
    %c0_219 = arith.constant 0 : index
    %c0_220 = arith.constant 0 : index
    %c0_221 = arith.constant 0 : index
    %255 = vector.load %arg18[%c0_219, %c0_220, %c0_221] : memref<2x64x128xbf16, #tpu.memory_space<vmem>>, vector<1x64x128xbf16>
    %256 = vector.shape_cast %255 : vector<1x64x128xbf16> to vector<64x128xbf16>
    %cst_222 = arith.constant dense<0.000000e+00> : vector<8x128xf32>
    %257 = tpu.matmul %254, %256, %cst_222 {dimension_numbers = #tpu.dot_dimension_numbers<[1], [0], [0], [1], [0, 0, 1, 1], [], []>} : vector<8x64xbf16>, vector<64x128xbf16>, vector<8x128xf32> -> vector<8x128xf32>
    %258 = arith.addf %250, %257 : vector<8x128xf32>
    %c1_223 = arith.constant 1 : index
    %c0_224 = arith.constant 0 : index
    %c0_225 = arith.constant 0 : index
    %259 = vector.load %arg17[%c1_223, %c0_224, %c0_225] : memref<2x8x4xbf16, #tpu.memory_space<vmem>>, vector<1x8x4xbf16>
    %260 = vector.shape_cast %259 : vector<1x8x4xbf16> to vector<8x4xbf16>
    %cst_226 = arith.constant dense<0.000000e+00> : vector<8x64xf32>
    %261 = tpu.matmul %260, %249, %cst_226 {dimension_numbers = #tpu.dot_dimension_numbers<[1], [0], [0], [1], [0, 0, 1, 1], [], []>} : vector<8x4xbf16>, vector<4x64xbf16>, vector<8x64xf32> -> vector<8x64xf32>
    %262 = arith.truncf %261 : vector<8x64xf32> to vector<8x64xbf16>
    %c1_227 = arith.constant 1 : index
    %c0_228 = arith.constant 0 : index
    %c0_229 = arith.constant 0 : index
    %263 = vector.load %arg18[%c1_227, %c0_228, %c0_229] : memref<2x64x128xbf16, #tpu.memory_space<vmem>>, vector<1x64x128xbf16>
    %264 = vector.shape_cast %263 : vector<1x64x128xbf16> to vector<64x128xbf16>
    %cst_230 = arith.constant dense<0.000000e+00> : vector<8x128xf32>
    %265 = tpu.matmul %262, %264, %cst_230 {dimension_numbers = #tpu.dot_dimension_numbers<[1], [0], [0], [1], [0, 0, 1, 1], [], []>} : vector<8x64xbf16>, vector<64x128xbf16>, vector<8x128xf32> -> vector<8x128xf32>
    %266 = arith.addf %258, %265 : vector<8x128xf32>
    %c0_231 = arith.constant 0 : index
    %c0_232 = arith.constant 0 : index
    %267 = vector.load %arg19[%c0_231, %c0_232] : memref<1x128xf32, #tpu.memory_space<vmem>>, vector<1x128xf32>
    %268 = vector.broadcast %267 : vector<1x128xf32> to vector<8x128xf32>
    %269 = arith.addf %266, %268 : vector<8x128xf32>
    %c0_233 = arith.constant 0 : index
    %c0_234 = arith.constant 0 : index
    %270 = vector.load %arg20[%c0_233, %c0_234] : memref<8x128xf32, #tpu.memory_space<vmem>>, vector<8x128xf32>
    tpu.vector_store %arg20[%c0_233, %c0_234], %269 {strides = array<i32>} : memref<8x128xf32, #tpu.memory_space<vmem>>, vector<8x128xf32>,
    return
  }
  func.func @transform_0(%arg0: i32) -> (i32, i32) {
    %c0_i32 = arith.constant 0 : i32
    %c0_i32_0 = arith.constant 0 : i32
    %c0_i32_1 = arith.constant 0 : i32
    return %c0_i32, %c0_i32_0 : i32, i32
  }
  func.func @transform_1(%arg0: i32) -> (i32, i32, i32) {
    %c0_i32 = arith.constant 0 : i32
    %c0_i32_0 = arith.constant 0 : i32
    %c0_i32_1 = arith.constant 0 : i32
    %c0_i32_2 = arith.constant 0 : i32
    return %c0_i32, %c0_i32_0, %c0_i32_1 : i32, i32, i32
  }
  func.func @transform_2(%arg0: i32) -> (i32, i32, i32) {
    %c0_i32 = arith.constant 0 : i32
    %c0_i32_0 = arith.constant 0 : i32
    %c0_i32_1 = arith.constant 0 : i32
    %c0_i32_2 = arith.constant 0 : i32
    return %c0_i32, %c0_i32_0, %c0_i32_1 : i32, i32, i32
  }
  func.func @transform_3(%arg0: i32) -> (i32, i32) {
    %c0_i32 = arith.constant 0 : i32
    %c0_i32_0 = arith.constant 0 : i32
    %c0_i32_1 = arith.constant 0 : i32
    return %c0_i32, %c0_i32_0 : i32, i32
  }
  func.func @transform_4(%arg0: i32) -> (i32, i32) {
    %c0_i32 = arith.constant 0 : i32
    %c0_i32_0 = arith.constant 0 : i32
    %c0_i32_1 = arith.constant 0 : i32
    return %c0_i32, %c0_i32_0 : i32, i32
  }
  func.func @transform_5(%arg0: i32) -> (i32, i32) {
    %c0_i32 = arith.constant 0 : i32
    %c0_i32_0 = arith.constant 0 : i32
    %c0_i32_1 = arith.constant 0 : i32
    return %c0_i32, %c0_i32_0 : i32, i32
  }
  func.func @transform_6(%arg0: i32) -> (i32, i32, i32) {
    %c0_i32 = arith.constant 0 : i32
    %c0_i32_0 = arith.constant 0 : i32
    %c0_i32_1 = arith.constant 0 : i32
    %c0_i32_2 = arith.constant 0 : i32
    return %c0_i32, %c0_i32_0, %c0_i32_1 : i32, i32, i32
  }
  func.func @transform_7(%arg0: i32) -> (i32, i32, i32) {
    %c0_i32 = arith.constant 0 : i32
    %c0_i32_0 = arith.constant 0 : i32
    %c0_i32_1 = arith.constant 0 : i32
    %c0_i32_2 = arith.constant 0 : i32
    return %c0_i32, %c0_i32_0, %c0_i32_1 : i32, i32, i32
  }
  func.func @transform_8(%arg0: i32) -> (i32, i32) {
    %c0_i32 = arith.constant 0 : i32
    %c0_i32_0 = arith.constant 0 : i32
    %c0_i32_1 = arith.constant 0 : i32
    return %c0_i32, %c0_i32_0 : i32, i32
  }
  func.func @transform_9(%arg0: i32) -> (i32, i32) {
    %c0_i32 = arith.constant 0 : i32
    %c0_i32_0 = arith.constant 0 : i32
    %c0_i32_1 = arith.constant 0 : i32
    return %c0_i32, %c0_i32_0 : i32, i32
  }
  func.func @transform_10(%arg0: i32) -> (i32, i32) {
    %c0_i32 = arith.constant 0 : i32
    %c0_i32_0 = arith.constant 0 : i32
    %c0_i32_1 = arith.constant 0 : i32
    return %c0_i32, %c0_i32_0 : i32, i32
  }
  func.func @transform_11(%arg0: i32) -> (i32, i32, i32) {
    %c0_i32 = arith.constant 0 : i32
    %c0_i32_0 = arith.constant 0 : i32
    %c0_i32_1 = arith.constant 0 : i32
    %c0_i32_2 = arith.constant 0 : i32
    return %c0_i32, %c0_i32_0, %c0_i32_1 : i32, i32, i32
  }
  func.func @transform_12(%arg0: i32) -> (i32, i32, i32) {
    %c0_i32 = arith.constant 0 : i32
    %c0_i32_0 = arith.constant 0 : i32
    %c0_i32_1 = arith.constant 0 : i32
    %c0_i32_2 = arith.constant 0 : i32
    return %c0_i32, %c0_i32_0, %c0_i32_1 : i32, i32, i32
  }
  func.func @transform_13(%arg0: i32) -> (i32, i32) {
    %c0_i32 = arith.constant 0 : i32
    %c0_i32_0 = arith.constant 0 : i32
    %c0_i32_1 = arith.constant 0 : i32
    return %c0_i32, %c0_i32_0 : i32, i32
  }
  func.func @transform_14(%arg0: i32) -> (i32, i32) {
    %c0_i32 = arith.constant 0 : i32
    %c0_i32_0 = arith.constant 0 : i32
    %c0_i32_1 = arith.constant 0 : i32
    return %c0_i32, %c0_i32_0 : i32, i32
  }
  func.func @transform_15(%arg0: i32) -> (i32, i32) {
    %c0_i32 = arith.constant 0 : i32
    %c0_i32_0 = arith.constant 0 : i32
    %c0_i32_1 = arith.constant 0 : i32
    return %c0_i32, %c0_i32_0 : i32, i32
  }
  func.func @transform_16(%arg0: i32) -> (i32, i32, i32) {
    %c0_i32 = arith.constant 0 : i32
    %c0_i32_0 = arith.constant 0 : i32
    %c0_i32_1 = arith.constant 0 : i32
    %c0_i32_2 = arith.constant 0 : i32
    return %c0_i32, %c0_i32_0, %c0_i32_1 : i32, i32, i32
  }
  func.func @transform_17(%arg0: i32) -> (i32, i32, i32) {
    %c0_i32 = arith.constant 0 : i32
    %c0_i32_0 = arith.constant 0 : i32
    %c0_i32_1 = arith.constant 0 : i32
    %c0_i32_2 = arith.constant 0 : i32
    return %c0_i32, %c0_i32_0, %c0_i32_1 : i32, i32, i32
  }
  func.func @transform_18(%arg0: i32) -> (i32, i32) {
    %c0_i32 = arith.constant 0 : i32
    %c0_i32_0 = arith.constant 0 : i32
    %c0_i32_1 = arith.constant 0 : i32
    return %c0_i32, %c0_i32_0 : i32, i32
  }
  func.func @transform_19(%arg0: i32) -> (i32, i32) {
    %c0_i32 = arith.constant 0 : i32
    %c0_i32_0 = arith.constant 0 : i32
    %c0_i32_1 = arith.constant 0 : i32
    return %c0_i32, %c0_i32_0 : i32, i32
  }
}

</mosaic_0001>

<bundles_post_ra>
// kernel: fused_forward.1
= control target key start
LH: loop header
LB: loop body
LE: loop exit
PB: predicated region body
PF: predicated region fallthrough
CT: control target
= control target key end

     0   :  { %s3544_s0 = inlined_call_operand.vmem [shape: bf16[32,64], index: 0, kind: input, shape index: {}]   ;;  %s3545_s1 = inlined_call_operand.vmem [shape: bf16[3,16,32], index: 1, kind: input, shape index: {}]   ;;  %s3546_s2 = inlined_call_operand.vmem [shape: bf16[9,64,64], index: 2, kind: input, shape index: {}]   ;;  %s3547_s3 = inlined_call_operand.vmem [shape: f32[64,8], index: 3, kind: input, shape index: {}]   ;;  %s3548_s4 = inlined_call_operand.vmem [shape: f32[8,64], index: 4, kind: input, shape index: {}]   ;;  %s3549_s5 = inlined_call_operand.vmem [shape: f32[2,8], index: 5, kind: input, shape index: {}]   ;;  %s3550_s6 = inlined_call_operand.vmem [shape: bf16[3,8,16], index: 6, kind: input, shape index: {}]   ;;  %s3551_s7 = inlined_call_operand.hbm [shape: bf16[9,64,64], index: 7, kind: input, shape index: {}]   ;;  %s3552_s8 = inlined_call_operand.vmem [shape: f32[64,16], index: 8, kind: input, shape index: {}]   ;;  %s3553_s9 = inlined_call_operand.vmem [shape: f32[16,64], index: 9, kind: input, shape index: {}]   ;;  %s3554_s10 = inlined_call_operand.vmem [shape: f32[2,16], index: 10, kind: input, shape index: {}]   ;;  %s3555_s11 = inlined_call_operand.vmem [shape: bf16[3,4,8], index: 11, kind: input, shape index: {}]   ;;  %s3556_s12 = inlined_call_operand.hbm [shape: bf16[9,64,64], index: 12, kind: input, shape index: {}]   ;;  %s3557_s13 = inlined_call_operand.vmem [shape: f32[64,32], index: 13, kind: input, shape index: {}]   ;;  %s3558_s14 = inlined_call_operand.vmem [shape: f32[32,64], index: 14, kind: input, shape index: {}]   ;;  %s3559_s15 = inlined_call_operand.vmem [shape: f32[2,32], index: 15, kind: input, shape index: {}]   ;;  %s3560_s16 = inlined_call_operand.vmem [shape: bf16[2,8,4], index: 16, kind: input, shape index: {}]   ;;  %s3561_s17 = inlined_call_operand.vmem [shape: bf16[2,64,128], index: 17, kind: input, shape index: {}]   ;;  %s3562_s18 = inlined_call_operand.vmem [shape: f32[1,128], index: 18, kind: input, shape index: {}]   ;;  %s3563_s19 = inlined_call_operand.vmem [shape: f32[8,128], index: 19, kind: output, shape index: {}]  }
   0x1   :  { %3568 = sst [smem:[#allocation8_spill]] %s3544_s0 }
   0x2   :  { %3569 = sst [smem:[#allocation9_spill]] %s3545_s1 }
   0x3   :  { %3570 = sst [smem:[#allocation10_spill]] %s3546_s2 }
   0x4   :  { %3571 = sst [smem:[#allocation11_spill]] %s3547_s3 }
   0x5   :  { %24 = vsyncpa [#allocation3], 0  ;;  %s44_s20 = sshll.u32 %s3551_s7, 4  ;;  %s45_s20 = int_to_ptr.hbm [resolvable:$true] %s44_s20 }
   0x6   :  { %25 = vsyncpa [#allocation5], 0  ;;  %s3083_s21 = smov [#allocation2]   ;;  %s65_s23 = sshll.u32 %s3556_s12, 4  ;;  %s66_s23 = int_to_ptr.hbm [resolvable:$true] %s65_s23 }
   0x7   :  { %s46_s1 = sshll.u32 %s3083_s21, 4  ;;  %s3084_s24 = smov 64   ;;  %s47_s1 = int_to_ptr.vmem [resolvable:$true] %s46_s1 }
   0x8   :  { %s3085_s25 = smov 4   ;;  %s3086_s3 = smov [#allocation4]  }
   0x9   :  { %52 = dma.hbm_to_vmem [thread:$0]  %s45_s20, 4608, %s47_s1, [#allocation3], %s3084_s24, %s3084_s24, %s3085_s25  }
   0xa   :  { %s67_s26 = sshll.u32 %s3086_s3, 4  ;;  %s68_s26 = int_to_ptr.vmem [resolvable:$true] %s67_s26 }
   0xb   :  { %73 = dma.hbm_to_vmem [thread:$0]  %s66_s23, 4608, %s68_s26, [#allocation5], %s3084_s24, %s3084_s24, %s3085_s25  }
   0xc   :  { %3079 = dma.done.wait [#allocation3], 4608  }
   0xd   :  { %3080 = vsyncadd [#allocation3], 4294962688 }
   0xe   :  { %3081 = dma.done.wait [#allocation5], 4608  }
   0xf   :  { %3082 = vsyncadd [#allocation5], 4294962688  ;;  %s3572_s28 = sld [smem:[#allocation8_spill]]  ;;  %vm118_vm0 = vcmask 261120   ;;  %vm178_vm1 = vcmask 523264   ;;  %vm672_vm2 = vcmask 64512  }
  0x10   :  { %s3573_s20 = sld [smem:[#allocation10_spill]]  ;;  %vm821_vm6 = vcmask 130048   ;;  %vm1474_vm10 = vcmask 1043456   ;;  %vm1990_vm11 = vcmask 257024   ;;  %vm2131_vm15 = vcmask 1041408  }
  0x11   :  { %s3574_s25 = sld [smem:[#allocation9_spill]] }
  0x12   :  { %s3575_s12 = sld [smem:[#allocation11_spill]] }
  0x15   :  { %v2900_v0 = vld [vmem:[%s3572_s28 + $0x8] sm:$0xff]  ;;  %v2899_v1 = vld [vmem:[%s3572_s28] sm:$0xff] }
  0x16   :  { %128 = vmatpush.bf16.msra.mxu1 %v2900_v0  ;;  %300 = vmatpush.bf16.msra.mxu0 %v2900_v0  ;;  %v2905_v2 = vld [vmem:[%s3573_s20 + $0x18] sm:$0xff]  ;;  %v2908_v8 = vld [vmem:[%s3573_s20 + $0x30] sm:$0xff]  ;;  %v2907_v11 = vld [vmem:[%s3573_s20 + $0x28] sm:$0xff] }
  0x17   :  { %v2913_v3 = vld [vmem:[%s3573_s20 + $0x58] sm:$0xff]  ;;  %224 = vmatpush.bf16.msra.mxu2 %v2905_v2  ;;  %v2901_v5 = vld [vmem:[%s3574_s25] sm:$0xff]  ;;  %v2914_v6 = vld [vmem:[%s3574_s25 + $0x8] sm:$0xff] }
  0x18   :  { %v2909_v4 = vld [vmem:[%s3573_s20 + $0x38] sm:$0xff]  ;;  %271 = vmatpush.bf16.msra.mxu3 %v2913_v3  ;;  %v2927_v7 = vld [vmem:[%s3574_s25 + $0x10] sm:$0xff]  ;;  %v2903_v12 = vld [vmem:[%s3573_s20 + $0x8] sm:$0xff] }
  0x19   :  { %v2904_v9 = vld [vmem:[%s3573_s20 + $0x10] sm:$0xff]  ;;  %v2911_v13 = vld [vmem:[%s3573_s20 + $0x48] sm:$0xff]  ;;  %v2906_v14 = vld [vmem:[%s3573_s20 + $0x20] sm:$0xff] }
  0x1a   :  { %129 = vmatpush.bf16.msra.mxu1 %v2899_v1  ;;  %301 = vmatpush.bf16.msra.mxu0 %v2899_v1  ;;  %v2912_v10 = vld [vmem:[%s3573_s20 + $0x50] sm:$0xff]  ;;  %v2902_v15 = vld [vmem:[%s3573_s20] sm:$0xff]  ;;  %v2918_v17 = vld [vmem:[%s3573_s20 + $0x78] sm:$0xff] }
  0x1b   :  { %225 = vmatpush.bf16.msra.mxu2 %v2904_v9  ;;  %v2910_v16 = vld [vmem:[%s3573_s20 + $0x40] sm:$0xff]  ;;  %v2922_v18 = vld [vmem:[%s3573_s20 + $0x98] sm:$0xff]  ;;  %v2917_v20 = vld [vmem:[%s3573_s20 + $0x70] sm:$0xff] }
  0x1c   :  { %272 = vmatpush.bf16.msra.mxu3 %v2912_v10  ;;  %v2926_v19 = vld [vmem:[%s3573_s20 + $0xb8] sm:$0xff]  ;;  %v2921_v21 = vld [vmem:[%s3573_s20 + $0x90] sm:$0xff]  ;;  %v2916_v23 = vld [vmem:[%s3573_s20 + $0x68] sm:$0xff] }
  0x1d   :  { %2289 = vmatmul.msk.bf16.vlgmr.msra.gmra.mxu1 %vm118_vm0, %v2901_v5  ;;  %2363 = vmatmul.msk.bf16.vlgmr.msra.gmra.mxu0 %vm118_vm0, %v2914_v6  ;;  %v2925_v22 = vld [vmem:[%s3573_s20 + $0xb0] sm:$0xff]  ;;  %v2920_v24 = vld [vmem:[%s3573_s20 + $0x88] sm:$0xff]  ;;  %v2915_v26 = vld [vmem:[%s3573_s20 + $0x60] sm:$0xff] }
  0x1e   :  { %476 = vmatpush.bf16.msrb.mxu0 %v2900_v0  ;;  %186 = vmatpush.bf16.msrb.mxu1 %v2909_v4  ;;  %v2924_v25 = vld [vmem:[%s3573_s20 + $0xa8] sm:$0xff]  ;;  %v2919_v27 = vld [vmem:[%s3573_s20 + $0x80] sm:$0xff]  ;;  %v2931_v32 = vld [vmem:[%s3573_s20 + $0xd8] sm:$0xff] }
  0x1f   :  { %226 = vmatpush.bf16.msra.mxu2 %v2903_v12  ;;  %v2923_v28 = vld [vmem:[%s3573_s20 + $0xa0] sm:$0xff]  ;;  %v2935_v34 = vld [vmem:[%s3573_s20 + $0xf8] sm:$0xff]  ;;  %v2930_v36 = vld [vmem:[%s3573_s20 + $0xd0] sm:$0xff] }
  0x20   :  { %273 = vmatpush.bf16.msra.mxu3 %v2911_v13  ;;  %v2939_v35 = vld [vmem:[%s3573_s20 + $0x118] sm:$0xff]  ;;  %v2934_v37 = vld [vmem:[%s3573_s20 + $0xf0] sm:$0xff]  ;;  %v2929_v39 = vld [vmem:[%s3573_s20 + $0xc8] sm:$0xff] }
  0x21   :  { %v2938_v38 = vld [vmem:[%s3573_s20 + $0x110] sm:$0xff]  ;;  %v2933_v40 = vld [vmem:[%s3573_s20 + $0xe8] sm:$0xff]  ;;  %v2928_v43 = vld [vmem:[%s3573_s20 + $0xc0] sm:$0xff] }
  0x22   :  { %477 = vmatpush.bf16.msrb.mxu0 %v2899_v1  ;;  %187 = vmatpush.bf16.msrb.mxu1 %v2908_v8  ;;  %v2937_v41 = vld [vmem:[%s3573_s20 + $0x108] sm:$0xff]  ;;  %v2932_v44 = vld [vmem:[%s3573_s20 + $0xe0] sm:$0xff]  ;;  %v642_v50 = vld [vmem:[%s3575_s12 + $0x38] sm:$0xff] }
  0x23   :  { %227 = vmatpush.bf16.msra.mxu2 %v2902_v15  ;;  %v2936_v45 = vld [vmem:[%s3573_s20 + $0x100] sm:$0xff]  ;;  %v641_v51 = vld [vmem:[%s3575_s12 + $0x30] sm:$0xff]  ;;  %v640_v53 = vld [vmem:[%s3575_s12 + $0x28] sm:$0xff] }
  0x24   :  { %274 = vmatpush.bf16.msra.mxu3 %v2910_v16  ;;  %v639_v54 = vld [vmem:[%s3575_s12 + $0x20] sm:$0xff]  ;;  %v638_v55 = vld [vmem:[%s3575_s12 + $0x18] sm:$0xff]  ;;  %v637_v57 = vld [vmem:[%s3575_s12 + $0x10] sm:$0xff] }
  0x25   :  { %v636_v60 = vld [vmem:[%s3575_s12 + $0x8] sm:$0xff]  ;;  %v635_v61 = vld [vmem:[%s3575_s12] sm:$0xff] }
  0x26   :  { %188 = vmatpush.bf16.msrb.mxu1 %v2907_v11  ;;  %657 = vmatpush.msra.mxu0 %v642_v50 }
  0x27   :  { %398 = vmatpush.bf16.msrb.mxu2 %v2922_v18 }
  0x28   :  { %447 = vmatpush.bf16.msrb.mxu3 %v2926_v19  ;;  %658 = vmatpush.msra.mxu0 %v641_v51 }
  0x2a   :  { %189 = vmatpush.bf16.msrb.mxu1 %v2906_v14  ;;  %659 = vmatpush.msra.mxu0 %v640_v53 }
  0x2b   :  { %399 = vmatpush.bf16.msrb.mxu2 %v2921_v21 }
  0x2c   :  { %448 = vmatpush.bf16.msrb.mxu3 %v2925_v22  ;;  %660 = vmatpush.msra.mxu0 %v639_v54 }
  0x2d   :  { %2445 = vmatmul.msk.bf16.vlgmr.msrb.gmra.mxu0 %vm118_vm0, %v2927_v7 }
  0x2e   :  { %349 = vmatpush.bf16.msra.mxu1 %v2918_v17  ;;  %661 = vmatpush.msra.mxu0 %v638_v55 }
  0x2f   :  { %400 = vmatpush.bf16.msrb.mxu2 %v2920_v24 }
  0x30   :  { %449 = vmatpush.bf16.msrb.mxu3 %v2924_v25  ;;  %662 = vmatpush.msra.mxu0 %v637_v57 }
  0x32   :  { %350 = vmatpush.bf16.msra.mxu1 %v2917_v20  ;;  %663 = vmatpush.msra.mxu0 %v636_v60 }
  0x33   :  { %401 = vmatpush.bf16.msrb.mxu2 %v2919_v27 }
  0x34   :  { %450 = vmatpush.bf16.msrb.mxu3 %v2923_v28  ;;  %664 = vmatpush.msra.mxu0 %v635_v61  ;;  %v683_v28 = vld [vmem:[%s3548_s4] sm:$0xff] }
  0x36   :  { %351 = vmatpush.bf16.msra.mxu1 %v2916_v23  ;;  %806 = vmatpush.msrb.mxu0 %v683_v28 }
  0x3a   :  { %352 = vmatpush.bf16.msra.mxu1 %v2915_v26 }
  0x9a   :  { %v131_v29 = vpop.f32.mrf.mxu1  ;;  %v303_v31 = vpop.f32.mrf.mxu0 }
  0xa2   :  { %v133_v30 = vpop.f32.mrf.mxu1  ;;  %v305_v42 = vpop.f32.mrf.mxu0 }
  0xa3   :  { %v136_v33 = vpack.c.bf16 %v133_v30, %v131_v29  ;;  %v308_v46 = vpack.c.bf16 %v305_v42, %v303_v31 }
  0xa5   :  { %2314 = vmatmul.msk.bf16.vlgmr.msrb.gmra.mxu1 %vm178_vm1, %v136_v33  ;;  %2331 = vmatmul.msk.bf16.vlgmr.msra.gmra.mxu2 %vm178_vm1, %v136_v33 }
  0xa6   :  { %2356 = vmatmul.msk.bf16.vlgmr.msra.gmra.mxu3 %vm178_vm1, %v136_v33  ;;  %525 = vmatpush.bf16.msrb.mxu1 %v2931_v32 }
  0xa7   :  { %574 = vmatpush.bf16.msra.mxu2 %v2935_v34  ;;  %623 = vmatpush.bf16.msra.mxu3 %v2939_v35 }
  0xaa   :  { %526 = vmatpush.bf16.msrb.mxu1 %v2930_v36  ;;  %v479_v47 = vpop.f32.mrf.mxu0 }
  0xab   :  { %575 = vmatpush.bf16.msra.mxu2 %v2934_v37  ;;  %624 = vmatpush.bf16.msra.mxu3 %v2938_v38 }
  0xae   :  { %527 = vmatpush.bf16.msrb.mxu1 %v2929_v39 }
  0xaf   :  { %576 = vmatpush.bf16.msra.mxu2 %v2933_v40  ;;  %625 = vmatpush.bf16.msra.mxu3 %v2937_v41 }
  0xb2   :  { %528 = vmatpush.bf16.msrb.mxu1 %v2928_v43  ;;  %v481_v48 = vpop.f32.mrf.mxu0 }
  0xb3   :  { %577 = vmatpush.bf16.msra.mxu2 %v2932_v44  ;;  %626 = vmatpush.bf16.msra.mxu3 %v2936_v45  ;;  %v484_v49 = vpack.c.bf16 %v481_v48, %v479_v47 }
  0xb5   :  { %2388 = vmatmul.msk.bf16.vlgmr.msra.gmra.mxu1 %vm178_vm1, %v308_v46  ;;  %2413 = vmatmul.msk.bf16.vlgmr.msrb.gmra.mxu2 %vm178_vm1, %v308_v46 }
  0xb6   :  { %2438 = vmatmul.msk.bf16.vlgmr.msrb.gmra.mxu3 %vm178_vm1, %v308_v46  ;;  %702 = vmatpush.msra.mxu1 %v683_v28 }
  0xb7   :  { %726 = vmatpush.msrb.mxu2 %v642_v50  ;;  %783 = vmatpush.msrb.mxu3 %v683_v28  ;;  %v2633_v28 = vld [vmem:[%s3550_s6 + $0x8] sm:$0xf] }
  0xb9   :  { %727 = vmatpush.msrb.mxu2 %v641_v51 }
  0xbb   :  { %728 = vmatpush.msrb.mxu2 %v640_v53 }
  0xbd   :  { %729 = vmatpush.msrb.mxu2 %v639_v54 }
  0xbf   :  { %730 = vmatpush.msrb.mxu2 %v638_v55  ;;  %v752_v55 = vld [vmem:[%s3549_s5 + $0x1] sm:$0x1] }
  0xc1   :  { %731 = vmatpush.msrb.mxu2 %v637_v57 }
  0xc3   :  { %732 = vmatpush.msrb.mxu2 %v636_v60 }
  0xc5   :  { %2470 = vmatmul.msk.bf16.vlgmr.msrb.gmra.mxu1 %vm178_vm1, %v484_v49  ;;  %2495 = vmatmul.msk.bf16.vlgmr.msra.gmra.mxu2 %vm178_vm1, %v484_v49 }
  0xc6   :  { %2520 = vmatmul.msk.bf16.vlgmr.msra.gmra.mxu3 %vm178_vm1, %v484_v49  ;;  %733 = vmatpush.msrb.mxu2 %v635_v61 }
 0x122   :  { %v191_v52 = vpop.f32.mrf.mxu1 }
 0x128   :  { %v229_v56 = vpop.f32.mrf.mxu2 }
 0x129   :  { %v276_v58 = vpop.f32.mrf.mxu3  ;;  %v230_v2 = vadd.f32 %v229_v56, %v191_v52 }
 0x12a   :  { %v193_v59 = vpop.f32.mrf.mxu1 }
 0x12b   :  { %v281_v5 = vadd.f32 %v276_v58, %v230_v2  ;;  %v751_v2 = vld [vmem:[%s3549_s5] sm:$0x1] }
 0x130   :  { %v231_v62 = vpop.f32.mrf.mxu2 }
 0x131   :  { %v278_v63 = vpop.f32.mrf.mxu3  ;;  %v232_v8 = vadd.f32 %v231_v62, %v193_v59 }
 0x132   :  { %v354_v0 = vpop.f32.mrf.mxu1 }
 0x133   :  { %v359_v6 = vadd.f32 %v354_v0, %v281_v5  ;;  %v282_v12 = vadd.f32 %v278_v63, %v232_v8 }
 0x138   :  { %v403_v1 = vpop.f32.mrf.mxu2 }
 0x139   :  { %v452_v3 = vpop.f32.mrf.mxu3  ;;  %v408_v9 = vadd.f32 %v403_v1, %v359_v6 }
 0x13a   :  { %v356_v4 = vpop.f32.mrf.mxu1 }
 0x13b   :  { %v457_v13 = vadd.f32 %v452_v3, %v408_v9  ;;  %v360_v14 = vadd.f32 %v356_v4, %v282_v12 }
 0x140   :  { %v405_v7 = vpop.f32.mrf.mxu2 }
 0x141   :  { %v454_v10 = vpop.f32.mrf.mxu3  ;;  %v409_v17 = vadd.f32 %v405_v7, %v360_v14 }
 0x142   :  { %v530_v11 = vpop.f32.mrf.mxu1 }
 0x143   :  { %v535_v15 = vadd.f32 %v530_v11, %v457_v13  ;;  %v458_v22 = vadd.f32 %v454_v10, %v409_v17  ;;  %v820_v17 = vld [vmem:[%s3550_s6] sm:$0xf] }
 0x148   :  { %v579_v16 = vpop.f32.mrf.mxu2 }
 0x149   :  { %v584_v18 = vadd.f32 %v579_v16, %v535_v15  ;;  %v628_v19 = vpop.f32.mrf.mxu3 }
 0x14a   :  { %v532_v21 = vpop.f32.mrf.mxu1 }
 0x14b   :  { %v633_v20 = vadd.f32 %v628_v19, %v584_v18  ;;  %v536_v23 = vadd.f32 %v532_v21, %v458_v22  ;;  %v2947_v18 = vld [vmem:[#allocation2 + $0x38] sm:$0xff]  ;;  %v2946_v21 = vld [vmem:[#allocation2 + $0x30] sm:$0xff] }
 0x14c   :  { %v2943_v19 = vld [vmem:[#allocation2 + $0x18] sm:$0xff]  ;;  %887 = vmatpush.bf16.msra.mxu2 %v2947_v18  ;;  %v2942_v22 = vld [vmem:[#allocation2 + $0x10] sm:$0xff] }
 0x14d   :  { %2521 = vmatmul.msk.f32.vlgmr.msra.gmra.mxu0 %vm178_vm1, %v633_v20  ;;  %924 = vmatpush.bf16.msra.mxu3 %v2943_v19 }
 0x150   :  { %v581_v24 = vpop.f32.mrf.mxu2  ;;  %888 = vmatpush.bf16.msra.mxu2 %v2946_v21 }
 0x151   :  { %v585_v25 = vadd.f32 %v581_v24, %v536_v23  ;;  %v630_v26 = vpop.f32.mrf.mxu3  ;;  %v2950_v23 = vld [vmem:[#allocation2 + $0x50] sm:$0xff]  ;;  %925 = vmatpush.bf16.msra.mxu3 %v2942_v22  ;;  %v2945_v24 = vld [vmem:[#allocation2 + $0x28] sm:$0xff] }
 0x153   :  { %v634_v27 = vadd.f32 %v630_v26, %v585_v25  ;;  %v2941_v25 = vld [vmem:[#allocation2 + $0x8] sm:$0xff] }
 0x154   :  { %v2949_v26 = vld [vmem:[#allocation2 + $0x48] sm:$0xff]  ;;  %889 = vmatpush.bf16.msra.mxu2 %v2945_v24 }
 0x155   :  { %2522 = vmatmul.msk.f32.gmra.mxu0 %vm178_vm1, %v634_v27  ;;  %926 = vmatpush.bf16.msra.mxu3 %v2941_v25 }
 0x15d   :  { %2527 = vmatmul.msk.f32.vlgmr.msrb.gmra.mxu0 %vm672_vm2, %v752_v55  ;;  %v2973_v55 = vld [vmem:[#allocation2 + $0x108] sm:$0xff] }
 0x1ca   :  { %v666_v29 = vpop.f32.mrf.mxu0 }
 0x1cb   :  { %v673_v31 = vsel %vm672_vm2, %v666_v29, 0.0  ;;  %v2944_v29 = vld [vmem:[#allocation2 + $0x20] sm:$0xff] }
 0x1cc   :  { %890 = vmatpush.bf16.msra.mxu2 %v2944_v29 }
 0x1d2   :  { %v669_v30 = vpop.f32.mrf.mxu0 }
 0x1d3   :  { %v674_v32 = vsel %vm672_vm2, %v669_v30, 0.0  ;;  %v2940_v30 = vld [vmem:[#allocation2] sm:$0xff] }
 0x1d4   :  { %v675_v33 = vadd.f32 %v674_v32, %v673_v31  ;;  %v2948_v31 = vld [vmem:[#allocation2 + $0x40] sm:$0xff]  ;;  %927 = vmatpush.bf16.msra.mxu3 %v2940_v30  ;;  %v2955_v32 = vld [vmem:[#allocation2 + $0x78] sm:$0xff] }
 0x1d6   :  { %v676_v34 = vrot.slane %v675_v33, 4 }
 0x1d8   :  { %v677_v35 = vadd.f32 %v676_v34, %v675_v33  ;;  %v2959_v33 = vld [vmem:[#allocation2 + $0x98] sm:$0xff] }
 0x1d9   :  { %v2963_v34 = vld [vmem:[#allocation2 + $0xb8] sm:$0xff] }
 0x1da   :  { %v678_v36 = vrot.slane %v677_v35, 2  ;;  %v808_v6 = vpop.f32.mrf.mxu0 }
 0x1db   :  { %v814_v9 = vperm.slane %v808_v6, 0 }
 0x1dc   :  { %v679_v37 = vadd.f32 %v678_v36, %v677_v35  ;;  %v2954_v35 = vld [vmem:[#allocation2 + $0x70] sm:$0xff] }
 0x1dd   :  { %v2958_v36 = vld [vmem:[#allocation2 + $0x90] sm:$0xff] }
 0x1de   :  { %v680_v38 = vrot.slane %v679_v37, 1 }
 0x1e0   :  { %v681_v39 = vadd.f32 %v680_v38, %v679_v37  ;;  %v2962_v37 = vld [vmem:[#allocation2 + $0xb0] sm:$0xff]  ;;  %v2953_v38 = vld [vmem:[#allocation2 + $0x68] sm:$0xff] }
 0x1e2   :  { %v682_v40 = vmul.f32 0.0078125, %v681_v39  ;;  %v2957_v39 = vld [vmem:[#allocation2 + $0x88] sm:$0xff] }
 0x1e4   :  { %2523 = vmatmul.msk.f32.vlgmr.msra.gmra.mxu1 %vm672_vm2, %v682_v40  ;;  %v2961_v40 = vld [vmem:[#allocation2 + $0xa8] sm:$0xff] }
 0x261   :  { %v704_v41 = vpop.f32.mrf.mxu1 }
 0x262   :  { %v707_v42 = vperm.slane %v704_v41, 0  ;;  %v2952_v41 = vld [vmem:[#allocation2 + $0x60] sm:$0xff] }
 0x264   :  { %v708_v43 = vsub.f32 %v633_v20, %v707_v42  ;;  %v709_v45 = vsub.f32 %v634_v27, %v707_v42  ;;  %v2951_v20 = vld [vmem:[#allocation2 + $0x58] sm:$0xff]  ;;  %v2580_v27 = vld [vmem:[%s3550_s6 + $0x4] sm:$0xf] }
 0x265   :  { %970 = vmatpush.bf16.msra.mxu0 %v2951_v20  ;;  %v2956_v42 = vld [vmem:[#allocation2 + $0x80] sm:$0xff] }
 0x266   :  { %v710_v44 = vmul.f32 %v708_v43, %v708_v43  ;;  %v711_v46 = vmul.f32 %v709_v45, %v709_v45 }
 0x268   :  { %2524 = vmatmul.msk.f32.vlgmr.msrb.gmra.mxu2 %vm178_vm1, %v710_v44 }
 0x269   :  { %971 = vmatpush.bf16.msra.mxu0 %v2950_v23  ;;  %1039 = vmatpush.bf16.msrb.mxu2 %v2955_v32 }
 0x26d   :  { %972 = vmatpush.bf16.msra.mxu0 %v2949_v26  ;;  %1040 = vmatpush.bf16.msrb.mxu2 %v2954_v35  ;;  %v1346_v35 = vld [vmem:[%s3553_s9 + $0x8] sm:$0xff] }
 0x270   :  { %2525 = vmatmul.msk.f32.gmra.mxu2 %vm178_vm1, %v711_v46 }
 0x271   :  { %973 = vmatpush.bf16.msra.mxu0 %v2948_v31  ;;  %1041 = vmatpush.bf16.msrb.mxu2 %v2953_v38 }
 0x275   :  { %1133 = vmatpush.bf16.msrb.mxu0 %v2963_v34  ;;  %1042 = vmatpush.bf16.msrb.mxu2 %v2952_v41 }
 0x279   :  { %1134 = vmatpush.bf16.msrb.mxu0 %v2962_v37 }
 0x27d   :  { %1135 = vmatpush.bf16.msrb.mxu0 %v2961_v40 }
 0x2eb   :  { %v735_v47 = vpop.f32.mrf.mxu2 }
 0x2ec   :  { %v741_v49 = vsel %vm672_vm2, %v735_v47, 0.0  ;;  %v2971_v47 = vld [vmem:[#allocation2 + $0xf8] sm:$0xff] }
 0x2f3   :  { %v738_v48 = vpop.f32.mrf.mxu2 }
 0x2f4   :  { %v742_v50 = vsel %vm672_vm2, %v738_v48, 0.0  ;;  %v2975_v48 = vld [vmem:[#allocation2 + $0x118] sm:$0xff] }
 0x2f5   :  { %v743_v51 = vadd.f32 %v742_v50, %v741_v49  ;;  %v2966_v49 = vld [vmem:[#allocation2 + $0xd0] sm:$0xff] }
 0x2f6   :  { %v2970_v50 = vld [vmem:[#allocation2 + $0xf0] sm:$0xff] }
 0x2f7   :  { %v744_v52 = vrot.slane %v743_v51, 4 }
 0x2f9   :  { %v745_v53 = vadd.f32 %v744_v52, %v743_v51  ;;  %v2974_v51 = vld [vmem:[#allocation2 + $0x110] sm:$0xff] }
 0x2fb   :  { %v746_v54 = vrot.slane %v745_v53, 2 }
 0x2fd   :  { %v747_v56 = vadd.f32 %v746_v54, %v745_v53  ;;  %v2965_v53 = vld [vmem:[#allocation2 + $0xc8] sm:$0xff] }
 0x2fe   :  { %v2969_v54 = vld [vmem:[#allocation2 + $0xe8] sm:$0xff] }
 0x2ff   :  { %v748_v57 = vrot.slane %v747_v56, 1 }
 0x301   :  { %v749_v58 = vadd.f32 %v748_v57, %v747_v56  ;;  %v2964_v56 = vld [vmem:[#allocation2 + $0xc0] sm:$0xff] }
 0x302   :  { %v2968_v57 = vld [vmem:[#allocation2 + $0xe0] sm:$0xff] }
 0x303   :  { %v750_v59 = vmul.f32 0.0078125, %v749_v58  ;;  %v2972_v58 = vld [vmem:[#allocation2 + $0x100] sm:$0xff] }
 0x305   :  { %v753_v60 = vadd.f32 1e-05, %v750_v59 }
 0x307   :  { %3025 = vrsqrt.f32 %v753_v60  ;;  %vm760_vm4 = vweird.f32 %v753_v60 }
 0x30d   :  { %v3026_v61 = vpop.eup %3025 }
 0x30e   :  { %v755_v62 = vmul.f32 %v3026_v61, %v753_v60  ;;  %vm761_vm3 = vweird.f32 %v3026_v61 }
 0x30f   :  { %vm762_vm5 = vmor %vm760_vm4, %vm761_vm3 }
 0x310   :  { %v756_v63 = vmul.f32 %v3026_v61, %v755_v62 }
 0x312   :  { %v757_v0 = vmul.f32 0.5, %v756_v63 }
 0x314   :  { %v758_v1 = vsub.f32 1.5, %v757_v0 }
 0x316   :  { %v759_v3 = vmul.f32 %v3026_v61, %v758_v1  ;;  %v1313_v1 = vld [vmem:[%s3552_s8 + $0x38] sm:$0xff] }
 0x318   :  { %v763_v4 = vsel %vm762_vm5, %v3026_v61, %v759_v3 }
 0x319   :  { %v764_v5 = vmul.f32 %v763_v4, %v751_v2  ;;  %v1312_v2 = vld [vmem:[%s3552_s8 + $0x30] sm:$0xff]  ;;  %v1311_v4 = vld [vmem:[%s3552_s8 + $0x28] sm:$0xff] }
 0x31b   :  { %2526 = vmatmul.msk.f32.vlgmr.msrb.gmra.mxu3 %vm672_vm2, %v764_v5  ;;  %v1310_v5 = vld [vmem:[%s3552_s8 + $0x20] sm:$0xff] }
 0x31c   :  { %1086 = vmatpush.bf16.msrb.mxu3 %v2959_v33 }
 0x320   :  { %1087 = vmatpush.bf16.msrb.mxu3 %v2958_v36  ;;  %v1345_v36 = vld [vmem:[%s3553_s9] sm:$0xff] }
 0x324   :  { %1088 = vmatpush.bf16.msrb.mxu3 %v2957_v39 }
 0x328   :  { %1089 = vmatpush.bf16.msrb.mxu3 %v2956_v42 }
 0x39e   :  { %v785_v7 = vpop.f32.mrf.mxu3 }
 0x39f   :  { %v811_v8 = vperm.slane %v785_v7, 0 }
 0x3a1   :  { %v812_v10 = vmul.f32 %v811_v8, %v708_v43  ;;  %v813_v11 = vmul.f32 %v811_v8, %v709_v45  ;;  %v2960_v43 = vld [vmem:[#allocation2 + $0xa0] sm:$0xff]  ;;  %v2967_v45 = vld [vmem:[#allocation2 + $0xd8] sm:$0xff] }
 0x3a2   :  { %1136 = vmatpush.bf16.msrb.mxu0 %v2960_v43  ;;  %v1309_v8 = vld [vmem:[%s3552_s8 + $0x18] sm:$0xff] }
 0x3a3   :  { %v815_v12 = vadd.f32 %v814_v9, %v812_v10  ;;  %v816_v13 = vadd.f32 %v814_v9, %v813_v11  ;;  %v1308_v9 = vld [vmem:[%s3552_s8 + $0x10] sm:$0xff]  ;;  %v1307_v11 = vld [vmem:[%s3552_s8 + $0x8] sm:$0xff] }
 0x3a5   :  { %v817_v14 = vmax.f32 %v815_v12, 0.0  ;;  %v818_v15 = vmax.f32 %v816_v13, 0.0  ;;  %v1306_v12 = vld [vmem:[%s3552_s8] sm:$0xff] }
 0x3a7   :  { %v819_v16 = vpack.c.bf16 %v818_v15, %v817_v14 }
 0x3a9   :  { %832 = vmatpush.bf16.msrb.mxu1 %v819_v16 }
 0x3ac   :  { %2528 = vmatmul.msk.bf16.vlgmr.msrb.gmra.mxu1 %vm821_vm6, %v820_v17 }
 0x3ad   :  { %992 = vmatpush.bf16.msra.mxu1 %v819_v16 }
 0x3b1   :  { %1155 = vmatpush.bf16.msrb.mxu1 %v819_v16 }
 0x3bc   :  { %2581 = vmatmul.msk.bf16.vlgmr.msra.gmra.mxu1 %vm821_vm6, %v2580_v27 }
 0x3bd   :  { %1325 = vmatpush.msra.mxu1 %v1313_v1 }
 0x3bf   :  { %1326 = vmatpush.msra.mxu1 %v1312_v2 }
 0x3c1   :  { %1327 = vmatpush.msra.mxu1 %v1311_v4 }
 0x3c3   :  { %1328 = vmatpush.msra.mxu1 %v1310_v5 }
 0x3c5   :  { %1329 = vmatpush.msra.mxu1 %v1309_v8 }
 0x3c7   :  { %1330 = vmatpush.msra.mxu1 %v1308_v9 }
 0x3c9   :  { %1331 = vmatpush.msra.mxu1 %v1307_v11 }
 0x3cb   :  { %1332 = vmatpush.msra.mxu1 %v1306_v12 }
 0x3cc   :  { %2634 = vmatmul.msk.bf16.vlgmr.msrb.gmra.mxu1 %vm821_vm6, %v2633_v28 }
 0x3cd   :  { %1364 = vmatpush.msrb.mxu1 %v1346_v35 }
 0x3cf   :  { %1365 = vmatpush.msrb.mxu1 %v1345_v36 }
 0x429   :  { %v834_v44 = vpop.f32.mrf.mxu1 }
 0x42a   :  { %v838_v46 = vpack.c.bf16 %v834_v44, %v834_v44 }
 0x42c   :  { %2545 = vmatmul.msk.bf16.vlgmr.msra.gmra.mxu2 %vm178_vm1, %v838_v46  ;;  %2562 = vmatmul.msk.bf16.vlgmr.msra.gmra.mxu3 %vm178_vm1, %v838_v46 }
 0x42d   :  { %2579 = vmatmul.msk.bf16.vlgmr.msra.gmra.mxu0 %vm178_vm1, %v838_v46  ;;  %1202 = vmatpush.bf16.msra.mxu2 %v2967_v45 }
 0x42e   :  { %1249 = vmatpush.bf16.msra.mxu3 %v2971_v47  ;;  %1296 = vmatpush.bf16.msra.mxu0 %v2975_v48 }
 0x431   :  { %v836_v52 = vpop.f32.mrf.mxu1  ;;  %1203 = vmatpush.bf16.msra.mxu2 %v2966_v49 }
 0x432   :  { %1250 = vmatpush.bf16.msra.mxu3 %v2970_v50  ;;  %1297 = vmatpush.bf16.msra.mxu0 %v2974_v51 }
 0x435   :  { %1204 = vmatpush.bf16.msra.mxu2 %v2965_v53 }
 0x436   :  { %1251 = vmatpush.bf16.msra.mxu3 %v2969_v54  ;;  %1298 = vmatpush.bf16.msra.mxu0 %v2973_v55  ;;  %v1405_v55 = vld [vmem:[%s3554_s10 + $0x1] sm:$0x1] }
 0x439   :  { %v994_v59 = vpop.f32.mrf.mxu1  ;;  %1205 = vmatpush.bf16.msra.mxu2 %v2964_v56 }
 0x43a   :  { %v998_v60 = vpack.c.bf16 %v994_v59, %v994_v59  ;;  %1252 = vmatpush.bf16.msra.mxu3 %v2968_v57  ;;  %1299 = vmatpush.bf16.msra.mxu0 %v2972_v58 }
 0x43c   :  { %2598 = vmatmul.msk.bf16.vlgmr.msrb.gmra.mxu2 %vm178_vm1, %v998_v60  ;;  %2615 = vmatmul.msk.bf16.vlgmr.msrb.gmra.mxu3 %vm178_vm1, %v998_v60 }
 0x43d   :  { %2632 = vmatmul.msk.bf16.vlgmr.msrb.gmra.mxu0 %vm178_vm1, %v998_v60  ;;  %1384 = vmatpush.msrb.mxu2 %v1313_v1 }
 0x43e   :  { %1435 = vmatpush.msrb.mxu3 %v1346_v35  ;;  %1458 = vmatpush.msrb.mxu0 %v1346_v35  ;;  %v2998_v35 = vld [vmem:[#allocation4 + $0xb0] sm:$0xff] }
 0x43f   :  { %1385 = vmatpush.msrb.mxu2 %v1312_v2 }
 0x440   :  { %1436 = vmatpush.msrb.mxu3 %v1345_v36  ;;  %1459 = vmatpush.msrb.mxu0 %v1345_v36  ;;  %v2989_v36 = vld [vmem:[#allocation4 + $0x68] sm:$0xff] }
 0x441   :  { %v996_v61 = vpop.f32.mrf.mxu1  ;;  %1386 = vmatpush.msrb.mxu2 %v1311_v4 }
 0x443   :  { %1387 = vmatpush.msrb.mxu2 %v1310_v5 }
 0x445   :  { %1388 = vmatpush.msrb.mxu2 %v1309_v8 }
 0x447   :  { %1389 = vmatpush.msrb.mxu2 %v1308_v9 }
 0x449   :  { %v1157_v62 = vpop.f32.mrf.mxu1  ;;  %1390 = vmatpush.msrb.mxu2 %v1307_v11 }
 0x44a   :  { %v1161_v63 = vpack.c.bf16 %v1157_v62, %v1157_v62 }
 0x44b   :  { %1391 = vmatpush.msrb.mxu2 %v1306_v12 }
 0x44c   :  { %2651 = vmatmul.msk.bf16.vlgmr.msra.gmra.mxu2 %vm178_vm1, %v1161_v63  ;;  %2668 = vmatmul.msk.bf16.vlgmr.msra.gmra.mxu3 %vm178_vm1, %v1161_v63 }
 0x44d   :  { %2685 = vmatmul.msk.bf16.vlgmr.msra.gmra.mxu0 %vm178_vm1, %v1161_v63 }
 0x451   :  { %v1159_v0 = vpop.f32.mrf.mxu1 }
 0x45d   :  { %2690 = vmatmul.msk.f32.vlgmr.msrb.gmra.mxu0 %vm821_vm6, %v1405_v55  ;;  %v3004_v55 = vld [vmem:[#allocation4 + $0xe0] sm:$0xff] }
 0x4aa   :  { %v975_v3 = vpop.f32.mrf.mxu0 }
 0x4af   :  { %v892_v6 = vpop.f32.mrf.mxu2  ;;  %v929_v7 = vpop.f32.mrf.mxu3 }
 0x4b0   :  { %v930_v18 = vadd.f32 %v929_v7, %v892_v6 }
 0x4b2   :  { %v977_v10 = vpop.f32.mrf.mxu0  ;;  %v979_v20 = vadd.f32 %v975_v3, %v930_v18  ;;  %v1404_v3 = vld [vmem:[%s3554_s10] sm:$0x1]  ;;  %v2987_v18 = vld [vmem:[#allocation4 + $0x58] sm:$0xff] }
 0x4b3   :  { %1623 = vmatpush.bf16.msra.mxu0 %v2987_v18 }
 0x4b7   :  { %v894_v13 = vpop.f32.mrf.mxu2  ;;  %v931_v14 = vpop.f32.mrf.mxu3 }
 0x4ba   :  { %v1138_v15 = vpop.f32.mrf.mxu0 }
 0x4bf   :  { %v1044_v16 = vpop.f32.mrf.mxu2  ;;  %v1091_v17 = vpop.f32.mrf.mxu3 }
 0x4c0   :  { %v1048_v21 = vadd.f32 %v1044_v16, %v979_v20  ;;  %v2983_v16 = vld [vmem:[#allocation4 + $0x38] sm:$0xff]  ;;  %v2978_v20 = vld [vmem:[#allocation4 + $0x10] sm:$0xff] }
 0x4c1   :  { %1540 = vmatpush.bf16.msra.mxu2 %v2983_v16 }
 0x4c2   :  { %v1140_v19 = vpop.f32.mrf.mxu0  ;;  %v1095_v24 = vadd.f32 %v1091_v17, %v1048_v21  ;;  %v2979_v17 = vld [vmem:[#allocation4 + $0x18] sm:$0xff]  ;;  %v2986_v21 = vld [vmem:[#allocation4 + $0x50] sm:$0xff] }
 0x4c3   :  { %1577 = vmatpush.bf16.msra.mxu3 %v2979_v17  ;;  %v2982_v19 = vld [vmem:[#allocation4 + $0x30] sm:$0xff]  ;;  %1624 = vmatpush.bf16.msra.mxu0 %v2986_v21 }
 0x4c4   :  { %v1142_v26 = vadd.f32 %v1138_v15, %v1095_v24  ;;  %v1470_v15 = vld [vmem:[%s3555_s11] sm:$0x3]  ;;  %v2985_v24 = vld [vmem:[#allocation4 + $0x48] sm:$0xff] }
 0x4c5   :  { %1541 = vmatpush.bf16.msra.mxu2 %v2982_v19 }
 0x4c7   :  { %v1046_v22 = vpop.f32.mrf.mxu2  ;;  %v1093_v23 = vpop.f32.mrf.mxu3  ;;  %1578 = vmatpush.bf16.msra.mxu3 %v2978_v20  ;;  %1625 = vmatpush.bf16.msra.mxu0 %v2985_v24 }
 0x4c8   :  { %v2981_v22 = vld [vmem:[#allocation4 + $0x28] sm:$0xff] }
 0x4c9   :  { %v2977_v23 = vld [vmem:[#allocation4 + $0x8] sm:$0xff]  ;;  %1542 = vmatpush.bf16.msra.mxu2 %v2981_v22 }
 0x4ca   :  { %v1301_v25 = vpop.f32.mrf.mxu0 }
 0x4cb   :  { %1579 = vmatpush.bf16.msra.mxu3 %v2977_v23 }
 0x4cf   :  { %v1207_v27 = vpop.f32.mrf.mxu2  ;;  %v1254_v28 = vpop.f32.mrf.mxu3 }
 0x4d0   :  { %v1211_v29 = vadd.f32 %v1207_v27, %v1142_v26  ;;  %v2796_v26 = vld [vmem:[%s3555_s11 + $0x4] sm:$0x3] }
 0x4d1   :  { %v2980_v27 = vld [vmem:[#allocation4 + $0x20] sm:$0xff] }
 0x4d2   :  { %v1258_v30 = vadd.f32 %v1254_v28, %v1211_v29  ;;  %v1303_v31 = vpop.f32.mrf.mxu0  ;;  %v2976_v28 = vld [vmem:[#allocation4] sm:$0xff]  ;;  %1543 = vmatpush.bf16.msra.mxu2 %v2980_v27 }
 0x4d3   :  { %v2984_v29 = vld [vmem:[#allocation4 + $0x40] sm:$0xff]  ;;  %1580 = vmatpush.bf16.msra.mxu3 %v2976_v28  ;;  %v2995_v31 = vld [vmem:[#allocation4 + $0x98] sm:$0xff] }
 0x4d4   :  { %v1305_v32 = vadd.f32 %v1301_v25, %v1258_v30  ;;  %v2743_v25 = vld [vmem:[%s3555_s11 + $0x2] sm:$0x3]  ;;  %1626 = vmatpush.bf16.msra.mxu0 %v2984_v29  ;;  %v2991_v30 = vld [vmem:[#allocation4 + $0x78] sm:$0xff] }
 0x4d6   :  { %2686 = vmatmul.msk.f32.vlgmr.msra.gmra.mxu1 %vm178_vm1, %v1305_v32 }
 0x4d7   :  { %v1209_v33 = vpop.f32.mrf.mxu2  ;;  %v1256_v34 = vpop.f32.mrf.mxu3 }
 0x4d8   :  { %v2990_v33 = vld [vmem:[#allocation4 + $0x70] sm:$0xff] }
 0x4d9   :  { %v2994_v34 = vld [vmem:[#allocation4 + $0x90] sm:$0xff] }
 0x4da   :  { %v1461_v6 = vpop.f32.mrf.mxu0 }
 0x4db   :  { %v1466_v9 = vperm.slane %v1461_v6, 0  ;;  %v1962_v6 = vld [vmem:[%s3557_s13 + $0x18] sm:$0xff] }
 0x553   :  { %v1334_v37 = vpop.f32.mrf.mxu1 }
 0x554   :  { %v1337_v38 = vsel %vm821_vm6, %v1334_v37, 0.0  ;;  %v2993_v37 = vld [vmem:[#allocation4 + $0x88] sm:$0xff] }
 0x555   :  { %v1338_v39 = vrot.slane %v1337_v38, 4 }
 0x557   :  { %v1339_v40 = vadd.f32 %v1338_v39, %v1337_v38  ;;  %v2997_v38 = vld [vmem:[#allocation4 + $0xa8] sm:$0xff]  ;;  %v2988_v39 = vld [vmem:[#allocation4 + $0x60] sm:$0xff] }
 0x559   :  { %v1340_v41 = vrot.slane %v1339_v40, 2 }
 0x55b   :  { %v1341_v42 = vadd.f32 %v1340_v41, %v1339_v40  ;;  %v2992_v40 = vld [vmem:[#allocation4 + $0x80] sm:$0xff] }
 0x55c   :  { %v2996_v41 = vld [vmem:[#allocation4 + $0xa0] sm:$0xff] }
 0x55d   :  { %v1342_v43 = vrot.slane %v1341_v42, 1 }
 0x55f   :  { %v1343_v44 = vadd.f32 %v1342_v43, %v1341_v42  ;;  %v3003_v43 = vld [vmem:[#allocation4 + $0xd8] sm:$0xff] }
 0x561   :  { %v1344_v45 = vmul.f32 0.03125, %v1343_v44 }
 0x563   :  { %2687 = vmatmul.msk.f32.vlgmr.msrb.gmra.mxu1 %vm821_vm6, %v1344_v45  ;;  %v3007_v45 = vld [vmem:[#allocation4 + $0xf8] sm:$0xff] }
 0x5e0   :  { %v1367_v46 = vpop.f32.mrf.mxu1 }
 0x5e1   :  { %v1370_v47 = vperm.slane %v1367_v46, 0  ;;  %v3011_v46 = vld [vmem:[#allocation4 + $0x118] sm:$0xff] }
 0x5e3   :  { %v1371_v48 = vsub.f32 %v1305_v32, %v1370_v47  ;;  %v2999_v32 = vld [vmem:[#allocation4 + $0xb8] sm:$0xff]  ;;  %v3002_v47 = vld [vmem:[#allocation4 + $0xd0] sm:$0xff] }
 0x5e4   :  { %1786 = vmatpush.bf16.msrb.mxu0 %v2999_v32 }
 0x5e5   :  { %v1372_v49 = vmul.f32 %v1371_v48, %v1371_v48 }
 0x5e7   :  { %2688 = vmatmul.msk.f32.vlgmr.msrb.gmra.mxu2 %vm178_vm1, %v1372_v49  ;;  %v3010_v49 = vld [vmem:[#allocation4 + $0x110] sm:$0xff] }
 0x5e8   :  { %1692 = vmatpush.bf16.msrb.mxu2 %v2991_v30  ;;  %1787 = vmatpush.bf16.msrb.mxu0 %v2998_v35  ;;  %v2000_v35 = vld [vmem:[%s3558_s14 + $0x8] sm:$0xff] }
 0x5ec   :  { %1693 = vmatpush.bf16.msrb.mxu2 %v2990_v33  ;;  %1788 = vmatpush.bf16.msrb.mxu0 %v2997_v38  ;;  %v2002_v33 = vld [vmem:[%s3558_s14 + $0x18] sm:$0xff] }
 0x5f0   :  { %1694 = vmatpush.bf16.msrb.mxu2 %v2989_v36  ;;  %1789 = vmatpush.bf16.msrb.mxu0 %v2996_v41  ;;  %v1999_v36 = vld [vmem:[%s3558_s14] sm:$0xff] }
 0x5f4   :  { %1695 = vmatpush.bf16.msrb.mxu2 %v2988_v39 }
 0x66a   :  { %v1393_v50 = vpop.f32.mrf.mxu2 }
 0x66b   :  { %v1396_v51 = vsel %vm821_vm6, %v1393_v50, 0.0 }
 0x66c   :  { %v1397_v52 = vrot.slane %v1396_v51, 4 }
 0x66e   :  { %v1398_v53 = vadd.f32 %v1397_v52, %v1396_v51  ;;  %v3001_v51 = vld [vmem:[#allocation4 + $0xc8] sm:$0xff] }
 0x66f   :  { %v3005_v52 = vld [vmem:[#allocation4 + $0xe8] sm:$0xff] }
 0x670   :  { %v1399_v54 = vrot.slane %v1398_v53, 2 }
 0x672   :  { %v1400_v56 = vadd.f32 %v1399_v54, %v1398_v53  ;;  %v3009_v53 = vld [vmem:[#allocation4 + $0x108] sm:$0xff]  ;;  %v3000_v54 = vld [vmem:[#allocation4 + $0xc0] sm:$0xff] }
 0x674   :  { %v1401_v57 = vrot.slane %v1400_v56, 1 }
 0x676   :  { %v1402_v58 = vadd.f32 %v1401_v57, %v1400_v56  ;;  %v3008_v56 = vld [vmem:[#allocation4 + $0x100] sm:$0xff] }
 0x678   :  { %v1403_v59 = vmul.f32 0.03125, %v1402_v58 }
 0x67a   :  { %v1406_v60 = vadd.f32 1e-05, %v1403_v59 }
 0x67c   :  { %3027 = vrsqrt.f32 %v1406_v60  ;;  %vm1413_vm8 = vweird.f32 %v1406_v60 }
 0x682   :  { %v3028_v61 = vpop.eup %3027 }
 0x683   :  { %v1408_v62 = vmul.f32 %v3028_v61, %v1406_v60  ;;  %vm1414_vm7 = vweird.f32 %v3028_v61 }
 0x684   :  { %vm1415_vm9 = vmor %vm1413_vm8, %vm1414_vm7 }
 0x685   :  { %v1409_v63 = vmul.f32 %v3028_v61, %v1408_v62 }
 0x687   :  { %v1410_v0 = vmul.f32 0.5, %v1409_v63  ;;  %v1966_v63 = vld [vmem:[%s3557_s13 + $0x38] sm:$0xff] }
 0x689   :  { %v1411_v1 = vsub.f32 1.5, %v1410_v0  ;;  %v1965_v0 = vld [vmem:[%s3557_s13 + $0x30] sm:$0xff] }
 0x68b   :  { %v1412_v2 = vmul.f32 %v3028_v61, %v1411_v1 }
 0x68d   :  { %v1416_v4 = vsel %vm1415_vm9, %v3028_v61, %v1412_v2  ;;  %v1964_v2 = vld [vmem:[%s3557_s13 + $0x28] sm:$0xff] }
 0x68e   :  { %v1417_v5 = vmul.f32 %v1416_v4, %v1404_v3  ;;  %v1963_v3 = vld [vmem:[%s3557_s13 + $0x20] sm:$0xff] }
 0x690   :  { %2689 = vmatmul.msk.f32.vlgmr.msrb.gmra.mxu3 %vm821_vm6, %v1417_v5 }
 0x691   :  { %1739 = vmatpush.bf16.msrb.mxu3 %v2995_v31 }
 0x695   :  { %1740 = vmatpush.bf16.msrb.mxu3 %v2994_v34  ;;  %v2001_v34 = vld [vmem:[%s3558_s14 + $0x10] sm:$0xff] }
 0x699   :  { %1741 = vmatpush.bf16.msrb.mxu3 %v2993_v37 }
 0x69d   :  { %1742 = vmatpush.bf16.msrb.mxu3 %v2992_v40 }
 0x713   :  { %v1438_v7 = vpop.f32.mrf.mxu3 }
 0x714   :  { %v1464_v8 = vperm.slane %v1438_v7, 0  ;;  %v1961_v7 = vld [vmem:[%s3557_s13 + $0x10] sm:$0xff] }
 0x716   :  { %v1465_v10 = vmul.f32 %v1464_v8, %v1371_v48  ;;  %v3006_v48 = vld [vmem:[#allocation4 + $0xf0] sm:$0xff] }
 0x718   :  { %v1467_v11 = vadd.f32 %v1466_v9, %v1465_v10  ;;  %v1960_v9 = vld [vmem:[%s3557_s13 + $0x8] sm:$0xff]  ;;  %v1959_v10 = vld [vmem:[%s3557_s13] sm:$0xff] }
 0x71a   :  { %v1468_v12 = vmax.f32 %v1467_v11, 0.0 }
 0x71c   :  { %v1469_v13 = vpack.c.bf16 %v1468_v12, %v1468_v12 }
 0x71e   :  { %v1476_v14 = vsel %vm1474_vm10, %v1469_v13, 0 }
 0x71f   :  { %1485 = vmatpush.bf16.msra.mxu1 %v1476_v14 }
 0x722   :  { %2691 = vmatmul.msk.bf16.vlgmr.msra.gmra.mxu1 %vm672_vm2, %v1470_v15 }
 0x723   :  { %1645 = vmatpush.bf16.msrb.mxu1 %v1476_v14 }
 0x727   :  { %1808 = vmatpush.bf16.msra.mxu1 %v1476_v14 }
 0x732   :  { %2744 = vmatmul.msk.bf16.vlgmr.msrb.gmra.mxu1 %vm672_vm2, %v2743_v25 }
 0x733   :  { %1978 = vmatpush.msrb.mxu1 %v1966_v63 }
 0x735   :  { %1979 = vmatpush.msrb.mxu1 %v1965_v0 }
 0x737   :  { %1980 = vmatpush.msrb.mxu1 %v1964_v2 }
 0x739   :  { %1981 = vmatpush.msrb.mxu1 %v1963_v3 }
 0x73b   :  { %1982 = vmatpush.msrb.mxu1 %v1962_v6 }
 0x73d   :  { %1983 = vmatpush.msrb.mxu1 %v1961_v7 }
 0x73f   :  { %1984 = vmatpush.msrb.mxu1 %v1960_v9 }
 0x741   :  { %1985 = vmatpush.msrb.mxu1 %v1959_v10 }
 0x742   :  { %2797 = vmatmul.msk.bf16.vlgmr.msra.gmra.mxu1 %vm672_vm2, %v2796_v26 }
 0x743   :  { %2018 = vmatpush.msra.mxu1 %v2002_v33 }
 0x745   :  { %2019 = vmatpush.msra.mxu1 %v2001_v34 }
 0x747   :  { %2020 = vmatpush.msra.mxu1 %v2000_v35 }
 0x749   :  { %2021 = vmatpush.msra.mxu1 %v1999_v36 }
 0x79f   :  { %v1487_v42 = vpop.f32.mrf.mxu1 }
 0x7a0   :  { %v1491_v44 = vpack.c.bf16 %v1487_v42, %v1487_v42 }
 0x7a2   :  { %2708 = vmatmul.msk.bf16.vlgmr.msra.gmra.mxu2 %vm178_vm1, %v1491_v44  ;;  %2725 = vmatmul.msk.bf16.vlgmr.msra.gmra.mxu3 %vm178_vm1, %v1491_v44 }
 0x7a3   :  { %2742 = vmatmul.msk.bf16.vlgmr.msra.gmra.mxu0 %vm178_vm1, %v1491_v44  ;;  %1855 = vmatpush.bf16.msra.mxu2 %v3003_v43 }
 0x7a4   :  { %1902 = vmatpush.bf16.msra.mxu3 %v3007_v45  ;;  %1949 = vmatpush.bf16.msra.mxu0 %v3011_v46 }
 0x7a7   :  { %v1489_v50 = vpop.f32.mrf.mxu1  ;;  %1856 = vmatpush.bf16.msra.mxu2 %v3002_v47 }
 0x7a8   :  { %1903 = vmatpush.bf16.msra.mxu3 %v3006_v48  ;;  %1950 = vmatpush.bf16.msra.mxu0 %v3010_v49 }
 0x7ab   :  { %1857 = vmatpush.bf16.msra.mxu2 %v3001_v51 }
 0x7ac   :  { %1904 = vmatpush.bf16.msra.mxu3 %v3005_v52  ;;  %1951 = vmatpush.bf16.msra.mxu0 %v3009_v53 }
 0x7af   :  { %v1647_v57 = vpop.f32.mrf.mxu1  ;;  %1858 = vmatpush.bf16.msra.mxu2 %v3000_v54 }
 0x7b0   :  { %v1651_v58 = vpack.c.bf16 %v1647_v57, %v1647_v57  ;;  %1905 = vmatpush.bf16.msra.mxu3 %v3004_v55  ;;  %1952 = vmatpush.bf16.msra.mxu0 %v3008_v56  ;;  %v2061_v55 = vld [vmem:[%s3559_s15 + $0x1] sm:$0x1] }
 0x7b2   :  { %2761 = vmatmul.msk.bf16.vlgmr.msrb.gmra.mxu2 %vm178_vm1, %v1651_v58  ;;  %2778 = vmatmul.msk.bf16.vlgmr.msrb.gmra.mxu3 %vm178_vm1, %v1651_v58 }
 0x7b3   :  { %2795 = vmatmul.msk.bf16.vlgmr.msrb.gmra.mxu0 %vm178_vm1, %v1651_v58  ;;  %2040 = vmatpush.msrb.mxu2 %v1966_v63 }
 0x7b4   :  { %2089 = vmatpush.msrb.mxu3 %v2002_v33  ;;  %2112 = vmatpush.msrb.mxu0 %v2002_v33  ;;  %v3024_v33 = vld [vmem:[%s3562_s18] ss:$0 sm:$0xff] }
 0x7b5   :  { %2041 = vmatpush.msrb.mxu2 %v1965_v0 }
 0x7b6   :  { %2090 = vmatpush.msrb.mxu3 %v2001_v34  ;;  %2113 = vmatpush.msrb.mxu0 %v2001_v34 }
 0x7b7   :  { %v1649_v59 = vpop.f32.mrf.mxu1  ;;  %2042 = vmatpush.msrb.mxu2 %v1964_v2 }
 0x7b8   :  { %2091 = vmatpush.msrb.mxu3 %v2000_v35  ;;  %2114 = vmatpush.msrb.mxu0 %v2000_v35 }
 0x7b9   :  { %2043 = vmatpush.msrb.mxu2 %v1963_v3  ;;  %v2060_v3 = vld [vmem:[%s3559_s15] sm:$0x1] }
 0x7ba   :  { %2092 = vmatpush.msrb.mxu3 %v1999_v36  ;;  %2115 = vmatpush.msrb.mxu0 %v1999_v36 }
 0x7bb   :  { %2044 = vmatpush.msrb.mxu2 %v1962_v6  ;;  %v3019_v6 = vld [vmem:[%s3561_s17 + $0x38] sm:$0xff] }
 0x7bd   :  { %2045 = vmatpush.msrb.mxu2 %v1961_v7  ;;  %v3015_v7 = vld [vmem:[%s3561_s17 + $0x18] sm:$0xff] }
 0x7bf   :  { %v1810_v60 = vpop.f32.mrf.mxu1  ;;  %2046 = vmatpush.msrb.mxu2 %v1960_v9  ;;  %v3014_v9 = vld [vmem:[%s3561_s17 + $0x10] sm:$0xff] }
 0x7c0   :  { %v1814_v61 = vpack.c.bf16 %v1810_v60, %v1810_v60 }
 0x7c1   :  { %2047 = vmatpush.msrb.mxu2 %v1959_v10  ;;  %v3017_v10 = vld [vmem:[%s3561_s17 + $0x28] sm:$0xff] }
 0x7c2   :  { %2814 = vmatmul.msk.bf16.vlgmr.msra.gmra.mxu2 %vm178_vm1, %v1814_v61  ;;  %2831 = vmatmul.msk.bf16.vlgmr.msra.gmra.mxu3 %vm178_vm1, %v1814_v61 }
 0x7c3   :  { %2848 = vmatmul.msk.bf16.vlgmr.msra.gmra.mxu0 %vm178_vm1, %v1814_v61  ;;  %2216 = vmatpush.bf16.msra.mxu3 %v3019_v6 }
 0x7c4   :  { %2256 = vmatpush.bf16.msra.mxu0 %v3015_v7 }
 0x7c7   :  { %v1812_v62 = vpop.f32.mrf.mxu1 }
 0x7c8   :  { %2257 = vmatpush.bf16.msra.mxu0 %v3014_v9 }
 0x7d3   :  { %2853 = vmatmul.msk.f32.vlgmr.msrb.gmra.mxu0 %vm118_vm0, %v2061_v55 }
 0x820   :  { %v1628_v1 = vpop.f32.mrf.mxu0 }
 0x825   :  { %v1545_v4 = vpop.f32.mrf.mxu2  ;;  %v1582_v5 = vpop.f32.mrf.mxu3 }
 0x826   :  { %v1583_v16 = vadd.f32 %v1582_v5, %v1545_v4 }
 0x828   :  { %v1630_v8 = vpop.f32.mrf.mxu0  ;;  %v1632_v18 = vadd.f32 %v1628_v1, %v1583_v16 }
 0x829   :  { %v3018_v8 = vld [vmem:[%s3561_s17 + $0x30] sm:$0xff] }
 0x82a   :  { %2217 = vmatpush.bf16.msra.mxu3 %v3018_v8 }
 0x82d   :  { %v1547_v11 = vpop.f32.mrf.mxu2  ;;  %v1584_v12 = vpop.f32.mrf.mxu3 }
 0x82e   :  { %v3013_v11 = vld [vmem:[%s3561_s17 + $0x8] sm:$0xff]  ;;  %2218 = vmatpush.bf16.msra.mxu3 %v3017_v10 }
 0x82f   :  { %2258 = vmatpush.bf16.msra.mxu0 %v3013_v11 }
 0x830   :  { %v1791_v13 = vpop.f32.mrf.mxu0 }
 0x835   :  { %v1697_v14 = vpop.f32.mrf.mxu2  ;;  %v1744_v15 = vpop.f32.mrf.mxu3 }
 0x836   :  { %v1701_v19 = vadd.f32 %v1697_v14, %v1632_v18 }
 0x838   :  { %v1793_v17 = vpop.f32.mrf.mxu0  ;;  %v1748_v22 = vadd.f32 %v1744_v15, %v1701_v19 }
 0x83a   :  { %v1795_v24 = vadd.f32 %v1791_v13, %v1748_v22  ;;  %v2126_v22 = vld [vmem:[%s3560_s16] sm:$0xf] }
 0x83d   :  { %v1699_v20 = vpop.f32.mrf.mxu2  ;;  %v1746_v21 = vpop.f32.mrf.mxu3 }
 0x83e   :  { %v2855_v21 = vld [vmem:[%s3560_s16 + $0x4] sm:$0xf] }
 0x840   :  { %v1954_v23 = vpop.f32.mrf.mxu0 }
 0x845   :  { %v1860_v25 = vpop.f32.mrf.mxu2  ;;  %v1907_v26 = vpop.f32.mrf.mxu3 }
 0x846   :  { %v1864_v27 = vadd.f32 %v1860_v25, %v1795_v24  ;;  %v3016_v24 = vld [vmem:[%s3561_s17 + $0x20] sm:$0xff] }
 0x847   :  { %2219 = vmatpush.bf16.msra.mxu3 %v3016_v24 }
 0x848   :  { %v1911_v28 = vadd.f32 %v1907_v26, %v1864_v27  ;;  %v1956_v29 = vpop.f32.mrf.mxu0 }
 0x84a   :  { %v1958_v30 = vadd.f32 %v1954_v23, %v1911_v28  ;;  %v3012_v23 = vld [vmem:[%s3561_s17] sm:$0xff] }
 0x84b   :  { %2259 = vmatpush.bf16.msra.mxu0 %v3012_v23 }
 0x84c   :  { %2849 = vmatmul.msk.f32.vlgmr.msrb.gmra.mxu1 %vm178_vm1, %v1958_v30 }
 0x84d   :  { %v1862_v31 = vpop.f32.mrf.mxu2  ;;  %v1909_v32 = vpop.f32.mrf.mxu3 }
 0x850   :  { %v2117_v12 = vpop.f32.mrf.mxu0 }
 0x851   :  { %v2122_v15 = vperm.slane %v2117_v12, 0 }
 0x8c9   :  { %v1987_v37 = vpop.f32.mrf.mxu1 }
 0x8ca   :  { %v1991_v38 = vsel %vm1990_vm11, %v1987_v37, 0.0 }
 0x8cb   :  { %v1992_v39 = vrot.slane %v1991_v38, 4 }
 0x8cd   :  { %v1993_v40 = vadd.f32 %v1992_v39, %v1991_v38 }
 0x8cf   :  { %v1994_v41 = vrot.slane %v1993_v40, 2 }
 0x8d1   :  { %v1995_v42 = vadd.f32 %v1994_v41, %v1993_v40 }
 0x8d3   :  { %v1996_v43 = vrot.slane %v1995_v42, 1 }
 0x8d5   :  { %v1997_v44 = vadd.f32 %v1996_v43, %v1995_v42 }
 0x8d7   :  { %v1998_v45 = vmul.f32 0.125, %v1997_v44 }
 0x8d9   :  { %2850 = vmatmul.msk.f32.vlgmr.msra.gmra.mxu1 %vm118_vm0, %v1998_v45 }
 0x956   :  { %v2023_v46 = vpop.f32.mrf.mxu1 }
 0x957   :  { %v2026_v47 = vperm.slane %v2023_v46, 0 }
 0x959   :  { %v2027_v48 = vsub.f32 %v1958_v30, %v2026_v47 }
 0x95b   :  { %v2028_v49 = vmul.f32 %v2027_v48, %v2027_v48 }
 0x95d   :  { %2851 = vmatmul.msk.f32.vlgmr.msrb.gmra.mxu2 %vm178_vm1, %v2028_v49 }
 0x9e0   :  { %v2049_v50 = vpop.f32.mrf.mxu2 }
 0x9e1   :  { %v2052_v51 = vsel %vm1990_vm11, %v2049_v50, 0.0 }
 0x9e2   :  { %v2053_v52 = vrot.slane %v2052_v51, 4 }
 0x9e4   :  { %v2054_v53 = vadd.f32 %v2053_v52, %v2052_v51 }
 0x9e6   :  { %v2055_v54 = vrot.slane %v2054_v53, 2 }
 0x9e8   :  { %v2056_v56 = vadd.f32 %v2055_v54, %v2054_v53 }
 0x9ea   :  { %v2057_v57 = vrot.slane %v2056_v56, 1 }
 0x9ec   :  { %v2058_v58 = vadd.f32 %v2057_v57, %v2056_v56 }
 0x9ee   :  { %v2059_v59 = vmul.f32 0.125, %v2058_v58 }
 0x9f0   :  { %v2062_v60 = vadd.f32 1e-05, %v2059_v59 }
 0x9f2   :  { %3029 = vrsqrt.f32 %v2062_v60  ;;  %vm2069_vm13 = vweird.f32 %v2062_v60 }
 0x9f8   :  { %v3030_v61 = vpop.eup %3029 }
 0x9f9   :  { %v2064_v62 = vmul.f32 %v3030_v61, %v2062_v60  ;;  %vm2070_vm12 = vweird.f32 %v3030_v61 }
 0x9fa   :  { %vm2071_vm14 = vmor %vm2069_vm13, %vm2070_vm12 }
 0x9fb   :  { %v2065_v63 = vmul.f32 %v3030_v61, %v2064_v62 }
 0x9fd   :  { %v2066_v0 = vmul.f32 0.5, %v2065_v63 }
 0x9ff   :  { %v2067_v1 = vsub.f32 1.5, %v2066_v0 }
 0xa01   :  { %v2068_v2 = vmul.f32 %v3030_v61, %v2067_v1 }
 0xa03   :  { %v2072_v4 = vsel %vm2071_vm14, %v3030_v61, %v2068_v2 }
 0xa04   :  { %v2073_v5 = vmul.f32 %v2072_v4, %v2060_v3 }
 0xa06   :  { %2852 = vmatmul.msk.f32.vlgmr.msrb.gmra.mxu3 %vm118_vm0, %v2073_v5  ;;  %vm2127_vm0 = vcmask 31744  }
 0xa89   :  { %v2094_v13 = vpop.f32.mrf.mxu3 }
 0xa8a   :  { %v2120_v14 = vperm.slane %v2094_v13, 0 }
 0xa8c   :  { %v2121_v16 = vmul.f32 %v2120_v14, %v2027_v48 }
 0xa8e   :  { %v2123_v17 = vadd.f32 %v2122_v15, %v2121_v16 }
 0xa90   :  { %v2124_v18 = vmax.f32 %v2123_v17, 0.0 }
 0xa92   :  { %v2125_v19 = vpack.c.bf16 %v2124_v18, %v2124_v18 }
 0xa94   :  { %v2133_v20 = vsel %vm2131_vm15, %v2125_v19, 0 }
 0xa95   :  { %2142 = vmatpush.bf16.msrb.mxu1 %v2133_v20  ;;  %2169 = vmatpush.bf16.msra.mxu2 %v2133_v20 }
 0xa98   :  { %2856 = vmatmul.msk.bf16.vlgmr.msra.gmra.mxu2 %vm2127_vm0, %v2855_v21  ;;  %2854 = vmatmul.msk.bf16.vlgmr.msrb.gmra.mxu1 %vm2127_vm0, %v2126_v22 }
 0xb15   :  { %v2144_v25 = vpop.f32.mrf.mxu1 }
 0xb16   :  { %v2148_v26 = vpack.c.bf16 %v2144_v25, %v2144_v25 }
 0xb18   :  { %2898 = vmatmul.msk.bf16.vlgmr.msra.gmra.mxu0 %vm178_vm1, %v2148_v26 }
 0xb1b   :  { %v2171_v27 = vpop.f32.mrf.mxu2 }
 0xb1c   :  { %v2175_v28 = vpack.c.bf16 %v2171_v27, %v2171_v27 }
 0xb1d   :  { %v2146_v29 = vpop.f32.mrf.mxu1 }
 0xb1e   :  { %2881 = vmatmul.msk.bf16.vlgmr.msra.gmra.mxu3 %vm178_vm1, %v2175_v28 }
 0xb23   :  { %v2173_v30 = vpop.f32.mrf.mxu2 }
 0xb95   :  { %v2261_v31 = vpop.f32.mrf.mxu0 }
 0xb9d   :  { %v2263_v32 = vpop.f32.mrf.mxu0 }
 0xba1   :  { %v2221_v34 = vpop.f32.mrf.mxu3 }
 0xba2   :  { %v2262_v35 = vadd.f32 %v2261_v31, %v2221_v34 }
 0xba4   :  { %v2269_v36 = vadd.f32 %v3024_v33, %v2262_v35 }
 0xba6   :  { %2270 = vst [vmem:[%s3563_s19] sm:$0xff] %v2269_v36 }
 0xba9   :  { %v2223_v37 = vpop.f32.mrf.mxu3 }
 0xbaa   :  { %2275 = vsyncpa [#allocation3], 1 }
 0xbab   :  { %2276 = vsyncpa [#allocation5], 1 }

</bundles_post_ra>
